<compile_context>
chip_gen: v7x
topology: tpu7x:2x2x1
jax: 0.10.0
libtpu: 0.0.40
codegen_flags: <defaults>
</compile_context>

<pallas_src>
import jax
import jax.numpy as jnp
from jax import lax
from jax.experimental import pallas as pl
from jax.experimental.pallas import tpu as pltpu

# ----------------------- scaled-down BERT config -----------------------
VOCAB = 1000
TYPE_VOCAB = 2
MAX_POS = 64
HIDDEN = 128
INTERMEDIATE = 256
NUM_LAYERS = 2
NUM_HEADS = 4
HEAD_DIM = HIDDEN // NUM_HEADS
NUM_CLASSES = 4
LN_EPS = 1e-12


# ----------------------------- Pallas kernel -----------------------------
def _layernorm(x, g, b):
    mu = jnp.mean(x, axis=-1, keepdims=True)
    var = jnp.mean((x - mu) ** 2, axis=-1, keepdims=True)
    return (x - mu) * lax.rsqrt(var + LN_EPS) * g + b


def _bert_encoder_kernel(x_ref, mask_ref, emb_g_ref, emb_b_ref,
                         wqkv_ref, bqkv_ref, wo_ref, bo_ref,
                         ln1_g_ref, ln1_b_ref, w1_ref, b1_ref,
                         w2_ref, b2_ref, ln2_g_ref, ln2_b_ref,
                         o_ref):
    S = x_ref.shape[1]
    H = x_ref.shape[2]
    NH, D = NUM_HEADS, HEAD_DIM
    scale = 1.0 / (D ** 0.5)

    # additive mask (0 / -10000), hoisted once; broadcasts to (NH, S, S)
    mask = mask_ref[...]                                  # (1, 1, S) f32

    # fused embedding LayerNorm; activation stays resident across the layer loop
    h = _layernorm(x_ref[0].astype(jnp.float32), emb_g_ref[...], emb_b_ref[...])

    for l in range(NUM_LAYERS):                           # unrolled in-kernel layer loop
        h_bf = h.astype(jnp.bfloat16)

        # ---- fused QKV projection: one full-width (S,H)@(H,3H) MXU dot ----
        qkv = jnp.dot(h_bf, wqkv_ref[l],
                      preferred_element_type=jnp.float32) + bqkv_ref[l]   # (S, 3H)
        q = qkv[:, 0 * H:1 * H]                           # (S, H) static lane slices
        k = qkv[:, 1 * H:2 * H]
        v = qkv[:, 2 * H:3 * H]

        # ---- per-head scores, batched softmax across heads ----
        s_heads = [
            lax.dot_general(q[:, hh * D:(hh + 1) * D].astype(jnp.bfloat16),
                            k[:, hh * D:(hh + 1) * D].astype(jnp.bfloat16),
                            dimension_numbers=(((1,), (1,)), ((), ())),
                            preferred_element_type=jnp.float32)           # (S, S)
            for hh in range(NH)
        ]
        s = jnp.stack(s_heads, axis=0) * scale + mask                     # (NH, S, S)
        s = s - jnp.max(s, axis=-1, keepdims=True)
        p = jnp.exp(s)
        p = p * pl.reciprocal(jnp.sum(p, axis=-1, keepdims=True), approx=True)

        # ---- per-head contexts, lane-concat, ONE output-projection dot ----
        ctx = jnp.concatenate(
            [jnp.dot(p[hh].astype(jnp.bfloat16),
                     v[:, hh * D:(hh + 1) * D].astype(jnp.bfloat16),
                     preferred_element_type=jnp.float32)                  # (S, D)
             for hh in range(NH)], axis=-1)                               # (S, H)
        attn = jnp.dot(ctx.astype(jnp.bfloat16), wo_ref[l],
                       preferred_element_type=jnp.float32) + bo_ref[l]    # (S, H)

        # residual + LN1 (fused, f32 epilogue)
        h = _layernorm(h + attn, ln1_g_ref[l], ln1_b_ref[l])

        # ---- feed-forward ----
        # TODO(synk): HF BERT uses exact erf-GELU; tanh approximation kept for safe EUP lowering.
        ff = jnp.dot(h.astype(jnp.bfloat16), w1_ref[l],
                     preferred_element_type=jnp.float32) + b1_ref[l]      # (S, I)
        ff = jax.nn.gelu(ff, approximate=True)
        ff = jnp.dot(ff.astype(jnp.bfloat16), w2_ref[l],
                     preferred_element_type=jnp.float32) + b2_ref[l]      # (S, H)

        # residual + LN2 (fused)
        h = _layernorm(h + ff, ln2_g_ref[l], ln2_b_ref[l])

    o_ref[0] = h.astype(o_ref.dtype)                      # lane-dense (S, 128) store


def bert_encoder(x, add_mask, params):
    B, S, H = x.shape
    L, I = NUM_LAYERS, INTERMEDIATE

    bmap = lambda b: (b, 0, 0)        # per-batch blocks
    full3 = lambda b: (0, 0, 0)       # whole stacked weight blocks (grid-invariant)
    full2 = lambda b: (0, 0)

    return pl.pallas_call(
        _bert_encoder_kernel,
        out_shape=jax.ShapeDtypeStruct((B, S, H), jnp.float32),
        grid=(B,),
        in_specs=[
            pl.BlockSpec((1, S, H), bmap),            # x (embedding sum)
            pl.BlockSpec((1, 1, S), bmap),            # additive attention mask
            pl.BlockSpec((1, H), full2),              # emb LN gamma
            pl.BlockSpec((1, H), full2),              # emb LN beta
            pl.BlockSpec((L, H, 3 * H), full3),       # packed WQKV
            pl.BlockSpec((L, 1, 3 * H), full3),       # packed QKV bias (lane-dense)
            pl.BlockSpec((L, H, H), full3),           # wo
            pl.BlockSpec((L, 1, H), full3),           # bo
            pl.BlockSpec((L, 1, H), full3),           # ln1 gamma
            pl.BlockSpec((L, 1, H), full3),           # ln1 beta
            pl.BlockSpec((L, H, I), full3),           # ff1 w
            pl.BlockSpec((L, 1, I), full3),           # ff1 b
            pl.BlockSpec((L, I, H), full3),           # ff2 w
            pl.BlockSpec((L, 1, H), full3),           # ff2 b
            pl.BlockSpec((L, 1, H), full3),           # ln2 gamma
            pl.BlockSpec((L, 1, H), full3),           # ln2 beta
        ],
        out_specs=pl.BlockSpec((1, S, H), bmap),
        compiler_params=pltpu.CompilerParams(
            dimension_semantics=("parallel",)),
    )(x, add_mask,
      params["emb_ln_g"], params["emb_ln_b"],
      params["wqkv"], params["bqkv"], params["wo"], params["bo"],
      params["ln1_g"], params["ln1_b"],
      params["w1"], params["b1"], params["w2"], params["b2"],
      params["ln2_g"], params["ln2_b"])


# -------------------------- params & forward glue --------------------------
def init_params(key):
    def normal(k, shape, dtype=jnp.float32):
        return (jax.random.normal(k, shape, jnp.float32) * 0.02).astype(dtype)

    L, H, I = NUM_LAYERS, HIDDEN, INTERMEDIATE
    keys = jax.random.split(key, 9)
    return {
        "word_emb": normal(keys[0], (VOCAB, H)),
        "pos_emb": normal(keys[1], (MAX_POS, H)),
        "type_emb": normal(keys[2], (TYPE_VOCAB, H)),
        "emb_ln_g": jnp.ones((1, H), jnp.float32),
        "emb_ln_b": jnp.zeros((1, H), jnp.float32),
        # per-layer stacked weights; matmul weights stored bf16 (MXU dtype),
        # biases / LN params f32.  QKV packed lane-dense as (L, H, 3H).
        "wqkv": normal(keys[3], (L, H, 3 * H), jnp.bfloat16),
        "bqkv": jnp.zeros((L, 1, 3 * H), jnp.float32),
        "wo": normal(keys[4], (L, H, H), jnp.bfloat16),
        "bo": jnp.zeros((L, 1, H), jnp.float32),
        "ln1_g": jnp.ones((L, 1, H), jnp.float32),
        "ln1_b": jnp.zeros((L, 1, H), jnp.float32),
        "w1": normal(keys[5], (L, H, I), jnp.bfloat16),
        "b1": jnp.zeros((L, 1, I), jnp.float32),
        "w2": normal(keys[6], (L, I, H), jnp.bfloat16),
        "b2": jnp.zeros((L, 1, H), jnp.float32),
        "ln2_g": jnp.ones((L, 1, H), jnp.float32),
        "ln2_b": jnp.zeros((L, 1, H), jnp.float32),
        "pool_w": normal(keys[7], (H, H)),
        "pool_b": jnp.zeros((H,), jnp.float32),
        "cls_w": normal(keys[8], (H, NUM_CLASSES)),
        "cls_b": jnp.zeros((NUM_CLASSES,), jnp.float32),
    }


@jax.jit
def bert_classifier_forward(params, input_ids, attention_mask, token_type_ids):
    B, S = input_ids.shape

    # ---- embeddings: data-dependent gathers stay in XLA ----
    word = params["word_emb"][input_ids]                       # (B, S, H)
    pos = params["pos_emb"][:S]                                # (S, H)
    tok = params["type_emb"][token_type_ids]                   # (B, S, H)
    x = word + pos[None, :, :] + tok                           # (B, S, H) f32

    # additive attention mask: 0 keep / -10000 masked (BERT semantics)
    add_mask = (1.0 - attention_mask.astype(jnp.float32)) * -10000.0
    add_mask = add_mask.reshape(B, 1, S)

    # ---- full transformer stack in one fused Pallas kernel ----
    h = bert_encoder(x, add_mask, params)                      # (B, S, H)

    # ---- pooler (CLS -> dense + tanh) and classifier head: tiny GEMVs
    # (M=B=2, N<=128) kept in XLA — Pallas tiles here would be mostly padding.
    cls = h[:, 0, :]                                           # (B, H)
    pooled = jnp.tanh(cls @ params["pool_w"] + params["pool_b"])
    # dropout(p=0.3) is identity at inference (PyTorch eval semantics).
    logits = pooled @ params["cls_w"] + params["cls_b"]        # (B, NUM_CLASSES)
    return logits


if __name__ == "__main__":
    B, S = 2, 8
    key = jax.random.PRNGKey(0)
    pkey, ikey = jax.random.split(key)
    params = init_params(pkey)

    input_ids = jax.random.randint(ikey, (B, S), 0, VOCAB, dtype=jnp.int32)
    attention_mask = jnp.ones((B, S), jnp.int32).at[:, 6:].set(0)   # last 2 tokens padded
    token_type_ids = jnp.zeros((B, S), jnp.int32)

    logits = bert_classifier_forward(params, input_ids, attention_mask, token_type_ids)
    jax.block_until_ready(logits)
    assert logits.shape == (B, NUM_CLASSES) and logits.dtype == jnp.float32
    assert bool(jnp.all(jnp.isfinite(logits)))
    print("KERNEL_OK")
</pallas_src>

<mosaic_0001>
module attributes {stable_mosaic.version = 11 : i64} {
  func.func @_bert_encoder_kernel(%arg0: i32, %arg1: memref<1x8x128xf32, #tpu.memory_space<vmem>>, %arg2: memref<1x1x8xf32, #tpu.memory_space<vmem>>, %arg3: memref<1x128xf32, #tpu.memory_space<vmem>>, %arg4: memref<1x128xf32, #tpu.memory_space<vmem>>, %arg5: memref<2x128x384xbf16, #tpu.memory_space<vmem>>, %arg6: memref<2x1x384xf32, #tpu.memory_space<vmem>>, %arg7: memref<2x128x128xbf16, #tpu.memory_space<vmem>>, %arg8: memref<2x1x128xf32, #tpu.memory_space<vmem>>, %arg9: memref<2x1x128xf32, #tpu.memory_space<vmem>>, %arg10: memref<2x1x128xf32, #tpu.memory_space<vmem>>, %arg11: memref<2x128x256xbf16, #tpu.memory_space<vmem>>, %arg12: memref<2x1x256xf32, #tpu.memory_space<vmem>>, %arg13: memref<2x256x128xbf16, #tpu.memory_space<vmem>>, %arg14: memref<2x1x128xf32, #tpu.memory_space<vmem>>, %arg15: memref<2x1x128xf32, #tpu.memory_space<vmem>>, %arg16: memref<2x1x128xf32, #tpu.memory_space<vmem>>, %arg17: memref<1x8x128xf32, #tpu.memory_space<vmem>>) attributes {dimension_semantics = [#tpu.dimension_semantics<parallel>], iteration_bounds = array<i64: 2>, scalar_prefetch = 0 : i64, scratch_operands = 0 : i64, tpu.core_type = #tpu.core_type<tc>, window_params = [{transform_indices = @transform_0, window_bounds = array<i64: 1, 8, 128>}, {transform_indices = @transform_1, window_bounds = array<i64: 1, 1, 8>}, {pipeline_mode = #tpu.pipeline_mode<synchronous>, transform_indices = @transform_2, window_bounds = array<i64: 1, 128>}, {pipeline_mode = #tpu.pipeline_mode<synchronous>, transform_indices = @transform_3, window_bounds = array<i64: 1, 128>}, {pipeline_mode = #tpu.pipeline_mode<synchronous>, transform_indices = @transform_4, window_bounds = array<i64: 2, 128, 384>}, {pipeline_mode = #tpu.pipeline_mode<synchronous>, transform_indices = @transform_5, window_bounds = array<i64: 2, 1, 384>}, {pipeline_mode = #tpu.pipeline_mode<synchronous>, transform_indices = @transform_6, window_bounds = array<i64: 2, 128, 128>}, {pipeline_mode = #tpu.pipeline_mode<synchronous>, transform_indices = @transform_7, window_bounds = array<i64: 2, 1, 128>}, {pipeline_mode = #tpu.pipeline_mode<synchronous>, transform_indices = @transform_8, window_bounds = array<i64: 2, 1, 128>}, {pipeline_mode = #tpu.pipeline_mode<synchronous>, transform_indices = @transform_9, window_bounds = array<i64: 2, 1, 128>}, {pipeline_mode = #tpu.pipeline_mode<synchronous>, transform_indices = @transform_10, window_bounds = array<i64: 2, 128, 256>}, {pipeline_mode = #tpu.pipeline_mode<synchronous>, transform_indices = @transform_11, window_bounds = array<i64: 2, 1, 256>}, {pipeline_mode = #tpu.pipeline_mode<synchronous>, transform_indices = @transform_12, window_bounds = array<i64: 2, 256, 128>}, {pipeline_mode = #tpu.pipeline_mode<synchronous>, transform_indices = @transform_13, window_bounds = array<i64: 2, 1, 128>}, {pipeline_mode = #tpu.pipeline_mode<synchronous>, transform_indices = @transform_14, window_bounds = array<i64: 2, 1, 128>}, {pipeline_mode = #tpu.pipeline_mode<synchronous>, transform_indices = @transform_15, window_bounds = array<i64: 2, 1, 128>}, {transform_indices = @transform_16, window_bounds = array<i64: 1, 8, 128>}]} {
    %c0 = arith.constant 0 : index
    %c0_0 = arith.constant 0 : index
    %c0_1 = arith.constant 0 : index
    %0 = vector.load %arg2[%c0, %c0_0, %c0_1] : memref<1x1x8xf32, #tpu.memory_space<vmem>>, vector<1x1x8xf32>
    %c0_2 = arith.constant 0 : index
    %c0_3 = arith.constant 0 : index
    %c0_4 = arith.constant 0 : index
    %1 = vector.load %arg1[%c0_2, %c0_3, %c0_4] : memref<1x8x128xf32, #tpu.memory_space<vmem>>, vector<1x8x128xf32>
    %2 = vector.shape_cast %1 : vector<1x8x128xf32> to vector<8x128xf32>
    %c0_5 = arith.constant 0 : index
    %c0_6 = arith.constant 0 : index
    %3 = vector.load %arg3[%c0_5, %c0_6] : memref<1x128xf32, #tpu.memory_space<vmem>>, vector<1x128xf32>
    %c0_7 = arith.constant 0 : index
    %c0_8 = arith.constant 0 : index
    %4 = vector.load %arg4[%c0_7, %c0_8] : memref<1x128xf32, #tpu.memory_space<vmem>>, vector<1x128xf32>
    %cst = arith.constant dense<0.000000e+00> : vector<8xf32>
    %5 = vector.multi_reduction <add>, %2, %cst [1] : vector<8x128xf32> to vector<8xf32>
    %6 = vector.shape_cast %5 : vector<8xf32> to vector<8x1xf32>
    %cst_9 = arith.constant 1.280000e+02 : f32
    %7 = vector.broadcast %cst_9 : f32 to vector<8x1xf32>
    %8 = arith.divf %6, %7 : vector<8x1xf32>
    %9 = vector.broadcast %8 : vector<8x1xf32> to vector<8x128xf32>
    %10 = arith.subf %2, %9 : vector<8x128xf32>
    %11 = arith.mulf %10, %10 : vector<8x128xf32>
    %cst_10 = arith.constant dense<0.000000e+00> : vector<8xf32>
    %12 = vector.multi_reduction <add>, %11, %cst_10 [1] : vector<8x128xf32> to vector<8xf32>
    %13 = vector.shape_cast %12 : vector<8xf32> to vector<8x1xf32>
    %cst_11 = arith.constant 1.280000e+02 : f32
    %14 = vector.broadcast %cst_11 : f32 to vector<8x1xf32>
    %15 = arith.divf %13, %14 : vector<8x1xf32>
    %16 = vector.broadcast %8 : vector<8x1xf32> to vector<8x128xf32>
    %17 = arith.subf %2, %16 : vector<8x128xf32>
    %cst_12 = arith.constant 9.99999996E-13 : f32
    %18 = vector.broadcast %cst_12 : f32 to vector<8x1xf32>
    %19 = arith.addf %15, %18 : vector<8x1xf32>
    %20 = math.rsqrt %19 : vector<8x1xf32>
    %21 = vector.broadcast %20 : vector<8x1xf32> to vector<8x128xf32>
    %22 = arith.mulf %17, %21 : vector<8x128xf32>
    %23 = vector.broadcast %3 : vector<1x128xf32> to vector<8x128xf32>
    %24 = arith.mulf %22, %23 : vector<8x128xf32>
    %25 = vector.broadcast %4 : vector<1x128xf32> to vector<8x128xf32>
    %26 = arith.addf %24, %25 : vector<8x128xf32>
    %27 = arith.truncf %26 : vector<8x128xf32> to vector<8x128xbf16>
    %c0_13 = arith.constant 0 : index
    %c0_14 = arith.constant 0 : index
    %c0_15 = arith.constant 0 : index
    %28 = vector.load %arg5[%c0_13, %c0_14, %c0_15] : memref<2x128x384xbf16, #tpu.memory_space<vmem>>, vector<1x128x384xbf16>
    %29 = vector.shape_cast %28 : vector<1x128x384xbf16> to vector<128x384xbf16>
    %cst_16 = arith.constant dense<0.000000e+00> : vector<8x384xf32>
    %30 = tpu.matmul %27, %29, %cst_16 {dimension_numbers = #tpu.dot_dimension_numbers<[1], [0], [0], [1], [0, 0, 1, 1], [], []>} : vector<8x128xbf16>, vector<128x384xbf16>, vector<8x384xf32> -> vector<8x384xf32>
    %c0_17 = arith.constant 0 : index
    %c0_18 = arith.constant 0 : index
    %c0_19 = arith.constant 0 : index
    %31 = vector.load %arg6[%c0_17, %c0_18, %c0_19] : memref<2x1x384xf32, #tpu.memory_space<vmem>>, vector<1x1x384xf32>
    %32 = vector.shape_cast %31 : vector<1x1x384xf32> to vector<1x384xf32>
    %33 = vector.broadcast %32 : vector<1x384xf32> to vector<8x384xf32>
    %34 = arith.addf %30, %33 : vector<8x384xf32>
    %35 = vector.extract_strided_slice %34 {offsets = [0, 0], sizes = [8, 128], strides = [1, 1]} : vector<8x384xf32> to vector<8x128xf32>
    %36 = vector.extract_strided_slice %34 {offsets = [0, 128], sizes = [8, 128], strides = [1, 1]} : vector<8x384xf32> to vector<8x128xf32>
    %37 = vector.extract_strided_slice %34 {offsets = [0, 256], sizes = [8, 128], strides = [1, 1]} : vector<8x384xf32> to vector<8x128xf32>
    %38 = vector.extract_strided_slice %35 {offsets = [0, 0], sizes = [8, 32], strides = [1, 1]} : vector<8x128xf32> to vector<8x32xf32>
    %39 = arith.truncf %38 : vector<8x32xf32> to vector<8x32xbf16>
    %40 = vector.extract_strided_slice %36 {offsets = [0, 0], sizes = [8, 32], strides = [1, 1]} : vector<8x128xf32> to vector<8x32xf32>
    %41 = arith.truncf %40 : vector<8x32xf32> to vector<8x32xbf16>
    %cst_20 = arith.constant dense<0.000000e+00> : vector<8x8xf32>
    %42 = tpu.matmul %39, %41, %cst_20 {dimension_numbers = #tpu.dot_dimension_numbers<[1], [1], [0], [0], [0, 0, 1, 0], [], []>} : vector<8x32xbf16>, vector<8x32xbf16>, vector<8x8xf32> -> vector<8x8xf32>
    %43 = vector.extract_strided_slice %35 {offsets = [0, 32], sizes = [8, 32], strides = [1, 1]} : vector<8x128xf32> to vector<8x32xf32>
    %44 = arith.truncf %43 : vector<8x32xf32> to vector<8x32xbf16>
    %45 = vector.extract_strided_slice %36 {offsets = [0, 32], sizes = [8, 32], strides = [1, 1]} : vector<8x128xf32> to vector<8x32xf32>
    %46 = arith.truncf %45 : vector<8x32xf32> to vector<8x32xbf16>
    %cst_21 = arith.constant dense<0.000000e+00> : vector<8x8xf32>
    %47 = tpu.matmul %44, %46, %cst_21 {dimension_numbers = #tpu.dot_dimension_numbers<[1], [1], [0], [0], [0, 0, 1, 0], [], []>} : vector<8x32xbf16>, vector<8x32xbf16>, vector<8x8xf32> -> vector<8x8xf32>
    %48 = vector.extract_strided_slice %35 {offsets = [0, 64], sizes = [8, 32], strides = [1, 1]} : vector<8x128xf32> to vector<8x32xf32>
    %49 = arith.truncf %48 : vector<8x32xf32> to vector<8x32xbf16>
    %50 = vector.extract_strided_slice %36 {offsets = [0, 64], sizes = [8, 32], strides = [1, 1]} : vector<8x128xf32> to vector<8x32xf32>
    %51 = arith.truncf %50 : vector<8x32xf32> to vector<8x32xbf16>
    %cst_22 = arith.constant dense<0.000000e+00> : vector<8x8xf32>
    %52 = tpu.matmul %49, %51, %cst_22 {dimension_numbers = #tpu.dot_dimension_numbers<[1], [1], [0], [0], [0, 0, 1, 0], [], []>} : vector<8x32xbf16>, vector<8x32xbf16>, vector<8x8xf32> -> vector<8x8xf32>
    %53 = vector.extract_strided_slice %35 {offsets = [0, 96], sizes = [8, 32], strides = [1, 1]} : vector<8x128xf32> to vector<8x32xf32>
    %54 = arith.truncf %53 : vector<8x32xf32> to vector<8x32xbf16>
    %55 = vector.extract_strided_slice %36 {offsets = [0, 96], sizes = [8, 32], strides = [1, 1]} : vector<8x128xf32> to vector<8x32xf32>
    %56 = arith.truncf %55 : vector<8x32xf32> to vector<8x32xbf16>
    %cst_23 = arith.constant dense<0.000000e+00> : vector<8x8xf32>
    %57 = tpu.matmul %54, %56, %cst_23 {dimension_numbers = #tpu.dot_dimension_numbers<[1], [1], [0], [0], [0, 0, 1, 0], [], []>} : vector<8x32xbf16>, vector<8x32xbf16>, vector<8x8xf32> -> vector<8x8xf32>
    %58 = vector.shape_cast %42 : vector<8x8xf32> to vector<1x8x8xf32>
    %59 = vector.shape_cast %47 : vector<8x8xf32> to vector<1x8x8xf32>
    %60 = vector.shape_cast %52 : vector<8x8xf32> to vector<1x8x8xf32>
    %61 = vector.shape_cast %57 : vector<8x8xf32> to vector<1x8x8xf32>
    %62 = tpu.concatenate %58, %59, %60, %61 in 0 : vector<1x8x8xf32>, vector<1x8x8xf32>, vector<1x8x8xf32>, vector<1x8x8xf32> -> vector<4x8x8xf32>
    %cst_24 = arith.constant 0.176776692 : f32
    %63 = vector.broadcast %cst_24 : f32 to vector<4x8x8xf32>
    %64 = arith.mulf %62, %63 : vector<4x8x8xf32>
    %65 = vector.broadcast %0 : vector<1x1x8xf32> to vector<4x8x8xf32>
    %66 = arith.addf %64, %65 : vector<4x8x8xf32>
    %cst_25 = arith.constant dense<0xFF800000> : vector<4x8xf32>
    %67 = vector.multi_reduction <maximumf>, %66, %cst_25 [2] : vector<4x8x8xf32> to vector<4x8xf32>
    %68 = vector.shape_cast %67 : vector<4x8xf32> to vector<4x8x1xf32>
    %69 = vector.broadcast %68 : vector<4x8x1xf32> to vector<4x8x8xf32>
    %70 = arith.subf %66, %69 : vector<4x8x8xf32>
    %71 = math.exp %70 : vector<4x8x8xf32>
    %cst_26 = arith.constant dense<0.000000e+00> : vector<4x8xf32>
    %72 = vector.multi_reduction <add>, %71, %cst_26 [2] : vector<4x8x8xf32> to vector<4x8xf32>
    %73 = vector.shape_cast %72 : vector<4x8xf32> to vector<4x8x1xf32>
    %74 = tpu.reciprocal %73 {approx = true} : vector<4x8x1xf32> -> vector<4x8x1xf32>
    %75 = vector.broadcast %74 : vector<4x8x1xf32> to vector<4x8x8xf32>
    %76 = arith.mulf %71, %75 : vector<4x8x8xf32>
    %77 = vector.extract_strided_slice %76 {offsets = [0, 0, 0], sizes = [1, 8, 8], strides = [1, 1, 1]} : vector<4x8x8xf32> to vector<1x8x8xf32>
    %78 = vector.shape_cast %77 : vector<1x8x8xf32> to vector<8x8xf32>
    %79 = arith.truncf %78 : vector<8x8xf32> to vector<8x8xbf16>
    %80 = vector.extract_strided_slice %37 {offsets = [0, 0], sizes = [8, 32], strides = [1, 1]} : vector<8x128xf32> to vector<8x32xf32>
    %81 = arith.truncf %80 : vector<8x32xf32> to vector<8x32xbf16>
    %cst_27 = arith.constant dense<0.000000e+00> : vector<8x32xf32>
    %82 = tpu.matmul %79, %81, %cst_27 {dimension_numbers = #tpu.dot_dimension_numbers<[1], [0], [0], [1], [0, 0, 1, 1], [], []>} : vector<8x8xbf16>, vector<8x32xbf16>, vector<8x32xf32> -> vector<8x32xf32>
    %83 = vector.extract_strided_slice %76 {offsets = [1, 0, 0], sizes = [1, 8, 8], strides = [1, 1, 1]} : vector<4x8x8xf32> to vector<1x8x8xf32>
    %84 = vector.shape_cast %83 : vector<1x8x8xf32> to vector<8x8xf32>
    %85 = arith.truncf %84 : vector<8x8xf32> to vector<8x8xbf16>
    %86 = vector.extract_strided_slice %37 {offsets = [0, 32], sizes = [8, 32], strides = [1, 1]} : vector<8x128xf32> to vector<8x32xf32>
    %87 = arith.truncf %86 : vector<8x32xf32> to vector<8x32xbf16>
    %cst_28 = arith.constant dense<0.000000e+00> : vector<8x32xf32>
    %88 = tpu.matmul %85, %87, %cst_28 {dimension_numbers = #tpu.dot_dimension_numbers<[1], [0], [0], [1], [0, 0, 1, 1], [], []>} : vector<8x8xbf16>, vector<8x32xbf16>, vector<8x32xf32> -> vector<8x32xf32>
    %89 = vector.extract_strided_slice %76 {offsets = [2, 0, 0], sizes = [1, 8, 8], strides = [1, 1, 1]} : vector<4x8x8xf32> to vector<1x8x8xf32>
    %90 = vector.shape_cast %89 : vector<1x8x8xf32> to vector<8x8xf32>
    %91 = arith.truncf %90 : vector<8x8xf32> to vector<8x8xbf16>
    %92 = vector.extract_strided_slice %37 {offsets = [0, 64], sizes = [8, 32], strides = [1, 1]} : vector<8x128xf32> to vector<8x32xf32>
    %93 = arith.truncf %92 : vector<8x32xf32> to vector<8x32xbf16>
    %cst_29 = arith.constant dense<0.000000e+00> : vector<8x32xf32>
    %94 = tpu.matmul %91, %93, %cst_29 {dimension_numbers = #tpu.dot_dimension_numbers<[1], [0], [0], [1], [0, 0, 1, 1], [], []>} : vector<8x8xbf16>, vector<8x32xbf16>, vector<8x32xf32> -> vector<8x32xf32>
    %95 = vector.extract_strided_slice %76 {offsets = [3, 0, 0], sizes = [1, 8, 8], strides = [1, 1, 1]} : vector<4x8x8xf32> to vector<1x8x8xf32>
    %96 = vector.shape_cast %95 : vector<1x8x8xf32> to vector<8x8xf32>
    %97 = arith.truncf %96 : vector<8x8xf32> to vector<8x8xbf16>
    %98 = vector.extract_strided_slice %37 {offsets = [0, 96], sizes = [8, 32], strides = [1, 1]} : vector<8x128xf32> to vector<8x32xf32>
    %99 = arith.truncf %98 : vector<8x32xf32> to vector<8x32xbf16>
    %cst_30 = arith.constant dense<0.000000e+00> : vector<8x32xf32>
    %100 = tpu.matmul %97, %99, %cst_30 {dimension_numbers = #tpu.dot_dimension_numbers<[1], [0], [0], [1], [0, 0, 1, 1], [], []>} : vector<8x8xbf16>, vector<8x32xbf16>, vector<8x32xf32> -> vector<8x32xf32>
    %101 = tpu.concatenate %82, %88, %94, %100 in 1 : vector<8x32xf32>, vector<8x32xf32>, vector<8x32xf32>, vector<8x32xf32> -> vector<8x128xf32>
    %102 = arith.truncf %101 : vector<8x128xf32> to vector<8x128xbf16>
    %c0_31 = arith.constant 0 : index
    %c0_32 = arith.constant 0 : index
    %c0_33 = arith.constant 0 : index
    %103 = vector.load %arg7[%c0_31, %c0_32, %c0_33] : memref<2x128x128xbf16, #tpu.memory_space<vmem>>, vector<1x128x128xbf16>
    %104 = vector.shape_cast %103 : vector<1x128x128xbf16> to vector<128x128xbf16>
    %cst_34 = arith.constant dense<0.000000e+00> : vector<8x128xf32>
    %105 = tpu.matmul %102, %104, %cst_34 {dimension_numbers = #tpu.dot_dimension_numbers<[1], [0], [0], [1], [0, 0, 1, 1], [], []>} : vector<8x128xbf16>, vector<128x128xbf16>, vector<8x128xf32> -> vector<8x128xf32>
    %c0_35 = arith.constant 0 : index
    %c0_36 = arith.constant 0 : index
    %c0_37 = arith.constant 0 : index
    %106 = vector.load %arg8[%c0_35, %c0_36, %c0_37] : memref<2x1x128xf32, #tpu.memory_space<vmem>>, vector<1x1x128xf32>
    %107 = vector.shape_cast %106 : vector<1x1x128xf32> to vector<1x128xf32>
    %108 = vector.broadcast %107 : vector<1x128xf32> to vector<8x128xf32>
    %109 = arith.addf %105, %108 : vector<8x128xf32>
    %110 = arith.addf %26, %109 : vector<8x128xf32>
    %c0_38 = arith.constant 0 : index
    %c0_39 = arith.constant 0 : index
    %c0_40 = arith.constant 0 : index
    %111 = vector.load %arg9[%c0_38, %c0_39, %c0_40] : memref<2x1x128xf32, #tpu.memory_space<vmem>>, vector<1x1x128xf32>
    %112 = vector.shape_cast %111 : vector<1x1x128xf32> to vector<1x128xf32>
    %c0_41 = arith.constant 0 : index
    %c0_42 = arith.constant 0 : index
    %c0_43 = arith.constant 0 : index
    %113 = vector.load %arg10[%c0_41, %c0_42, %c0_43] : memref<2x1x128xf32, #tpu.memory_space<vmem>>, vector<1x1x128xf32>
    %114 = vector.shape_cast %113 : vector<1x1x128xf32> to vector<1x128xf32>
    %cst_44 = arith.constant dense<0.000000e+00> : vector<8xf32>
    %115 = vector.multi_reduction <add>, %110, %cst_44 [1] : vector<8x128xf32> to vector<8xf32>
    %116 = vector.shape_cast %115 : vector<8xf32> to vector<8x1xf32>
    %cst_45 = arith.constant 1.280000e+02 : f32
    %117 = vector.broadcast %cst_45 : f32 to vector<8x1xf32>
    %118 = arith.divf %116, %117 : vector<8x1xf32>
    %119 = vector.broadcast %118 : vector<8x1xf32> to vector<8x128xf32>
    %120 = arith.subf %110, %119 : vector<8x128xf32>
    %121 = arith.mulf %120, %120 : vector<8x128xf32>
    %cst_46 = arith.constant dense<0.000000e+00> : vector<8xf32>
    %122 = vector.multi_reduction <add>, %121, %cst_46 [1] : vector<8x128xf32> to vector<8xf32>
    %123 = vector.shape_cast %122 : vector<8xf32> to vector<8x1xf32>
    %cst_47 = arith.constant 1.280000e+02 : f32
    %124 = vector.broadcast %cst_47 : f32 to vector<8x1xf32>
    %125 = arith.divf %123, %124 : vector<8x1xf32>
    %126 = vector.broadcast %118 : vector<8x1xf32> to vector<8x128xf32>
    %127 = arith.subf %110, %126 : vector<8x128xf32>
    %cst_48 = arith.constant 9.99999996E-13 : f32
    %128 = vector.broadcast %cst_48 : f32 to vector<8x1xf32>
    %129 = arith.addf %125, %128 : vector<8x1xf32>
    %130 = math.rsqrt %129 : vector<8x1xf32>
    %131 = vector.broadcast %130 : vector<8x1xf32> to vector<8x128xf32>
    %132 = arith.mulf %127, %131 : vector<8x128xf32>
    %133 = vector.broadcast %112 : vector<1x128xf32> to vector<8x128xf32>
    %134 = arith.mulf %132, %133 : vector<8x128xf32>
    %135 = vector.broadcast %114 : vector<1x128xf32> to vector<8x128xf32>
    %136 = arith.addf %134, %135 : vector<8x128xf32>
    %137 = arith.truncf %136 : vector<8x128xf32> to vector<8x128xbf16>
    %c0_49 = arith.constant 0 : index
    %c0_50 = arith.constant 0 : index
    %c0_51 = arith.constant 0 : index
    %138 = vector.load %arg11[%c0_49, %c0_50, %c0_51] : memref<2x128x256xbf16, #tpu.memory_space<vmem>>, vector<1x128x256xbf16>
    %139 = vector.shape_cast %138 : vector<1x128x256xbf16> to vector<128x256xbf16>
    %cst_52 = arith.constant dense<0.000000e+00> : vector<8x256xf32>
    %140 = tpu.matmul %137, %139, %cst_52 {dimension_numbers = #tpu.dot_dimension_numbers<[1], [0], [0], [1], [0, 0, 1, 1], [], []>} : vector<8x128xbf16>, vector<128x256xbf16>, vector<8x256xf32> -> vector<8x256xf32>
    %c0_53 = arith.constant 0 : index
    %c0_54 = arith.constant 0 : index
    %c0_55 = arith.constant 0 : index
    %141 = vector.load %arg12[%c0_53, %c0_54, %c0_55] : memref<2x1x256xf32, #tpu.memory_space<vmem>>, vector<1x1x256xf32>
    %142 = vector.shape_cast %141 : vector<1x1x256xf32> to vector<1x256xf32>
    %143 = vector.broadcast %142 : vector<1x256xf32> to vector<8x256xf32>
    %144 = arith.addf %140, %143 : vector<8x256xf32>
    %145 = arith.mulf %144, %144 : vector<8x256xf32>
    %146 = arith.mulf %144, %145 : vector<8x256xf32>
    %cst_56 = arith.constant 4.471500e-02 : f32
    %147 = vector.broadcast %cst_56 : f32 to vector<8x256xf32>
    %148 = arith.mulf %147, %146 : vector<8x256xf32>
    %149 = arith.addf %144, %148 : vector<8x256xf32>
    %cst_57 = arith.constant 0.797884583 : f32
    %150 = vector.broadcast %cst_57 : f32 to vector<8x256xf32>
    %151 = arith.mulf %150, %149 : vector<8x256xf32>
    %152 = math.tanh %151 : vector<8x256xf32>
    %cst_58 = arith.constant 1.000000e+00 : f32
    %153 = vector.broadcast %cst_58 : f32 to vector<8x256xf32>
    %154 = arith.addf %153, %152 : vector<8x256xf32>
    %cst_59 = arith.constant 5.000000e-01 : f32
    %155 = vector.broadcast %cst_59 : f32 to vector<8x256xf32>
    %156 = arith.mulf %155, %154 : vector<8x256xf32>
    %157 = arith.mulf %144, %156 : vector<8x256xf32>
    %158 = arith.truncf %157 : vector<8x256xf32> to vector<8x256xbf16>
    %c0_60 = arith.constant 0 : index
    %c0_61 = arith.constant 0 : index
    %c0_62 = arith.constant 0 : index
    %159 = vector.load %arg13[%c0_60, %c0_61, %c0_62] : memref<2x256x128xbf16, #tpu.memory_space<vmem>>, vector<1x256x128xbf16>
    %160 = vector.shape_cast %159 : vector<1x256x128xbf16> to vector<256x128xbf16>
    %cst_63 = arith.constant dense<0.000000e+00> : vector<8x128xf32>
    %161 = tpu.matmul %158, %160, %cst_63 {dimension_numbers = #tpu.dot_dimension_numbers<[1], [0], [0], [1], [0, 0, 1, 1], [], []>} : vector<8x256xbf16>, vector<256x128xbf16>, vector<8x128xf32> -> vector<8x128xf32>
    %c0_64 = arith.constant 0 : index
    %c0_65 = arith.constant 0 : index
    %c0_66 = arith.constant 0 : index
    %162 = vector.load %arg14[%c0_64, %c0_65, %c0_66] : memref<2x1x128xf32, #tpu.memory_space<vmem>>, vector<1x1x128xf32>
    %163 = vector.shape_cast %162 : vector<1x1x128xf32> to vector<1x128xf32>
    %164 = vector.broadcast %163 : vector<1x128xf32> to vector<8x128xf32>
    %165 = arith.addf %161, %164 : vector<8x128xf32>
    %166 = arith.addf %136, %165 : vector<8x128xf32>
    %c0_67 = arith.constant 0 : index
    %c0_68 = arith.constant 0 : index
    %c0_69 = arith.constant 0 : index
    %167 = vector.load %arg15[%c0_67, %c0_68, %c0_69] : memref<2x1x128xf32, #tpu.memory_space<vmem>>, vector<1x1x128xf32>
    %168 = vector.shape_cast %167 : vector<1x1x128xf32> to vector<1x128xf32>
    %c0_70 = arith.constant 0 : index
    %c0_71 = arith.constant 0 : index
    %c0_72 = arith.constant 0 : index
    %169 = vector.load %arg16[%c0_70, %c0_71, %c0_72] : memref<2x1x128xf32, #tpu.memory_space<vmem>>, vector<1x1x128xf32>
    %170 = vector.shape_cast %169 : vector<1x1x128xf32> to vector<1x128xf32>
    %cst_73 = arith.constant dense<0.000000e+00> : vector<8xf32>
    %171 = vector.multi_reduction <add>, %166, %cst_73 [1] : vector<8x128xf32> to vector<8xf32>
    %172 = vector.shape_cast %171 : vector<8xf32> to vector<8x1xf32>
    %cst_74 = arith.constant 1.280000e+02 : f32
    %173 = vector.broadcast %cst_74 : f32 to vector<8x1xf32>
    %174 = arith.divf %172, %173 : vector<8x1xf32>
    %175 = vector.broadcast %174 : vector<8x1xf32> to vector<8x128xf32>
    %176 = arith.subf %166, %175 : vector<8x128xf32>
    %177 = arith.mulf %176, %176 : vector<8x128xf32>
    %cst_75 = arith.constant dense<0.000000e+00> : vector<8xf32>
    %178 = vector.multi_reduction <add>, %177, %cst_75 [1] : vector<8x128xf32> to vector<8xf32>
    %179 = vector.shape_cast %178 : vector<8xf32> to vector<8x1xf32>
    %cst_76 = arith.constant 1.280000e+02 : f32
    %180 = vector.broadcast %cst_76 : f32 to vector<8x1xf32>
    %181 = arith.divf %179, %180 : vector<8x1xf32>
    %182 = vector.broadcast %174 : vector<8x1xf32> to vector<8x128xf32>
    %183 = arith.subf %166, %182 : vector<8x128xf32>
    %cst_77 = arith.constant 9.99999996E-13 : f32
    %184 = vector.broadcast %cst_77 : f32 to vector<8x1xf32>
    %185 = arith.addf %181, %184 : vector<8x1xf32>
    %186 = math.rsqrt %185 : vector<8x1xf32>
    %187 = vector.broadcast %186 : vector<8x1xf32> to vector<8x128xf32>
    %188 = arith.mulf %183, %187 : vector<8x128xf32>
    %189 = vector.broadcast %168 : vector<1x128xf32> to vector<8x128xf32>
    %190 = arith.mulf %188, %189 : vector<8x128xf32>
    %191 = vector.broadcast %170 : vector<1x128xf32> to vector<8x128xf32>
    %192 = arith.addf %190, %191 : vector<8x128xf32>
    %193 = arith.truncf %192 : vector<8x128xf32> to vector<8x128xbf16>
    %c1 = arith.constant 1 : index
    %c0_78 = arith.constant 0 : index
    %c0_79 = arith.constant 0 : index
    %194 = vector.load %arg5[%c1, %c0_78, %c0_79] : memref<2x128x384xbf16, #tpu.memory_space<vmem>>, vector<1x128x384xbf16>
    %195 = vector.shape_cast %194 : vector<1x128x384xbf16> to vector<128x384xbf16>
    %cst_80 = arith.constant dense<0.000000e+00> : vector<8x384xf32>
    %196 = tpu.matmul %193, %195, %cst_80 {dimension_numbers = #tpu.dot_dimension_numbers<[1], [0], [0], [1], [0, 0, 1, 1], [], []>} : vector<8x128xbf16>, vector<128x384xbf16>, vector<8x384xf32> -> vector<8x384xf32>
    %c1_81 = arith.constant 1 : index
    %c0_82 = arith.constant 0 : index
    %c0_83 = arith.constant 0 : index
    %197 = vector.load %arg6[%c1_81, %c0_82, %c0_83] : memref<2x1x384xf32, #tpu.memory_space<vmem>>, vector<1x1x384xf32>
    %198 = vector.shape_cast %197 : vector<1x1x384xf32> to vector<1x384xf32>
    %199 = vector.broadcast %198 : vector<1x384xf32> to vector<8x384xf32>
    %200 = arith.addf %196, %199 : vector<8x384xf32>
    %201 = vector.extract_strided_slice %200 {offsets = [0, 0], sizes = [8, 128], strides = [1, 1]} : vector<8x384xf32> to vector<8x128xf32>
    %202 = vector.extract_strided_slice %200 {offsets = [0, 128], sizes = [8, 128], strides = [1, 1]} : vector<8x384xf32> to vector<8x128xf32>
    %203 = vector.extract_strided_slice %200 {offsets = [0, 256], sizes = [8, 128], strides = [1, 1]} : vector<8x384xf32> to vector<8x128xf32>
    %204 = vector.extract_strided_slice %201 {offsets = [0, 0], sizes = [8, 32], strides = [1, 1]} : vector<8x128xf32> to vector<8x32xf32>
    %205 = arith.truncf %204 : vector<8x32xf32> to vector<8x32xbf16>
    %206 = vector.extract_strided_slice %202 {offsets = [0, 0], sizes = [8, 32], strides = [1, 1]} : vector<8x128xf32> to vector<8x32xf32>
    %207 = arith.truncf %206 : vector<8x32xf32> to vector<8x32xbf16>
    %cst_84 = arith.constant dense<0.000000e+00> : vector<8x8xf32>
    %208 = tpu.matmul %205, %207, %cst_84 {dimension_numbers = #tpu.dot_dimension_numbers<[1], [1], [0], [0], [0, 0, 1, 0], [], []>} : vector<8x32xbf16>, vector<8x32xbf16>, vector<8x8xf32> -> vector<8x8xf32>
    %209 = vector.extract_strided_slice %201 {offsets = [0, 32], sizes = [8, 32], strides = [1, 1]} : vector<8x128xf32> to vector<8x32xf32>
    %210 = arith.truncf %209 : vector<8x32xf32> to vector<8x32xbf16>
    %211 = vector.extract_strided_slice %202 {offsets = [0, 32], sizes = [8, 32], strides = [1, 1]} : vector<8x128xf32> to vector<8x32xf32>
    %212 = arith.truncf %211 : vector<8x32xf32> to vector<8x32xbf16>
    %cst_85 = arith.constant dense<0.000000e+00> : vector<8x8xf32>
    %213 = tpu.matmul %210, %212, %cst_85 {dimension_numbers = #tpu.dot_dimension_numbers<[1], [1], [0], [0], [0, 0, 1, 0], [], []>} : vector<8x32xbf16>, vector<8x32xbf16>, vector<8x8xf32> -> vector<8x8xf32>
    %214 = vector.extract_strided_slice %201 {offsets = [0, 64], sizes = [8, 32], strides = [1, 1]} : vector<8x128xf32> to vector<8x32xf32>
    %215 = arith.truncf %214 : vector<8x32xf32> to vector<8x32xbf16>
    %216 = vector.extract_strided_slice %202 {offsets = [0, 64], sizes = [8, 32], strides = [1, 1]} : vector<8x128xf32> to vector<8x32xf32>
    %217 = arith.truncf %216 : vector<8x32xf32> to vector<8x32xbf16>
    %cst_86 = arith.constant dense<0.000000e+00> : vector<8x8xf32>
    %218 = tpu.matmul %215, %217, %cst_86 {dimension_numbers = #tpu.dot_dimension_numbers<[1], [1], [0], [0], [0, 0, 1, 0], [], []>} : vector<8x32xbf16>, vector<8x32xbf16>, vector<8x8xf32> -> vector<8x8xf32>
    %219 = vector.extract_strided_slice %201 {offsets = [0, 96], sizes = [8, 32], strides = [1, 1]} : vector<8x128xf32> to vector<8x32xf32>
    %220 = arith.truncf %219 : vector<8x32xf32> to vector<8x32xbf16>
    %221 = vector.extract_strided_slice %202 {offsets = [0, 96], sizes = [8, 32], strides = [1, 1]} : vector<8x128xf32> to vector<8x32xf32>
    %222 = arith.truncf %221 : vector<8x32xf32> to vector<8x32xbf16>
    %cst_87 = arith.constant dense<0.000000e+00> : vector<8x8xf32>
    %223 = tpu.matmul %220, %222, %cst_87 {dimension_numbers = #tpu.dot_dimension_numbers<[1], [1], [0], [0], [0, 0, 1, 0], [], []>} : vector<8x32xbf16>, vector<8x32xbf16>, vector<8x8xf32> -> vector<8x8xf32>
    %224 = vector.shape_cast %208 : vector<8x8xf32> to vector<1x8x8xf32>
    %225 = vector.shape_cast %213 : vector<8x8xf32> to vector<1x8x8xf32>
    %226 = vector.shape_cast %218 : vector<8x8xf32> to vector<1x8x8xf32>
    %227 = vector.shape_cast %223 : vector<8x8xf32> to vector<1x8x8xf32>
    %228 = tpu.concatenate %224, %225, %226, %227 in 0 : vector<1x8x8xf32>, vector<1x8x8xf32>, vector<1x8x8xf32>, vector<1x8x8xf32> -> vector<4x8x8xf32>
    %cst_88 = arith.constant 0.176776692 : f32
    %229 = vector.broadcast %cst_88 : f32 to vector<4x8x8xf32>
    %230 = arith.mulf %228, %229 : vector<4x8x8xf32>
    %231 = vector.broadcast %0 : vector<1x1x8xf32> to vector<4x8x8xf32>
    %232 = arith.addf %230, %231 : vector<4x8x8xf32>
    %cst_89 = arith.constant dense<0xFF800000> : vector<4x8xf32>
    %233 = vector.multi_reduction <maximumf>, %232, %cst_89 [2] : vector<4x8x8xf32> to vector<4x8xf32>
    %234 = vector.shape_cast %233 : vector<4x8xf32> to vector<4x8x1xf32>
    %235 = vector.broadcast %234 : vector<4x8x1xf32> to vector<4x8x8xf32>
    %236 = arith.subf %232, %235 : vector<4x8x8xf32>
    %237 = math.exp %236 : vector<4x8x8xf32>
    %cst_90 = arith.constant dense<0.000000e+00> : vector<4x8xf32>
    %238 = vector.multi_reduction <add>, %237, %cst_90 [2] : vector<4x8x8xf32> to vector<4x8xf32>
    %239 = vector.shape_cast %238 : vector<4x8xf32> to vector<4x8x1xf32>
    %240 = tpu.reciprocal %239 {approx = true} : vector<4x8x1xf32> -> vector<4x8x1xf32>
    %241 = vector.broadcast %240 : vector<4x8x1xf32> to vector<4x8x8xf32>
    %242 = arith.mulf %237, %241 : vector<4x8x8xf32>
    %243 = vector.extract_strided_slice %242 {offsets = [0, 0, 0], sizes = [1, 8, 8], strides = [1, 1, 1]} : vector<4x8x8xf32> to vector<1x8x8xf32>
    %244 = vector.shape_cast %243 : vector<1x8x8xf32> to vector<8x8xf32>
    %245 = arith.truncf %244 : vector<8x8xf32> to vector<8x8xbf16>
    %246 = vector.extract_strided_slice %203 {offsets = [0, 0], sizes = [8, 32], strides = [1, 1]} : vector<8x128xf32> to vector<8x32xf32>
    %247 = arith.truncf %246 : vector<8x32xf32> to vector<8x32xbf16>
    %cst_91 = arith.constant dense<0.000000e+00> : vector<8x32xf32>
    %248 = tpu.matmul %245, %247, %cst_91 {dimension_numbers = #tpu.dot_dimension_numbers<[1], [0], [0], [1], [0, 0, 1, 1], [], []>} : vector<8x8xbf16>, vector<8x32xbf16>, vector<8x32xf32> -> vector<8x32xf32>
    %249 = vector.extract_strided_slice %242 {offsets = [1, 0, 0], sizes = [1, 8, 8], strides = [1, 1, 1]} : vector<4x8x8xf32> to vector<1x8x8xf32>
    %250 = vector.shape_cast %249 : vector<1x8x8xf32> to vector<8x8xf32>
    %251 = arith.truncf %250 : vector<8x8xf32> to vector<8x8xbf16>
    %252 = vector.extract_strided_slice %203 {offsets = [0, 32], sizes = [8, 32], strides = [1, 1]} : vector<8x128xf32> to vector<8x32xf32>
    %253 = arith.truncf %252 : vector<8x32xf32> to vector<8x32xbf16>
    %cst_92 = arith.constant dense<0.000000e+00> : vector<8x32xf32>
    %254 = tpu.matmul %251, %253, %cst_92 {dimension_numbers = #tpu.dot_dimension_numbers<[1], [0], [0], [1], [0, 0, 1, 1], [], []>} : vector<8x8xbf16>, vector<8x32xbf16>, vector<8x32xf32> -> vector<8x32xf32>
    %255 = vector.extract_strided_slice %242 {offsets = [2, 0, 0], sizes = [1, 8, 8], strides = [1, 1, 1]} : vector<4x8x8xf32> to vector<1x8x8xf32>
    %256 = vector.shape_cast %255 : vector<1x8x8xf32> to vector<8x8xf32>
    %257 = arith.truncf %256 : vector<8x8xf32> to vector<8x8xbf16>
    %258 = vector.extract_strided_slice %203 {offsets = [0, 64], sizes = [8, 32], strides = [1, 1]} : vector<8x128xf32> to vector<8x32xf32>
    %259 = arith.truncf %258 : vector<8x32xf32> to vector<8x32xbf16>
    %cst_93 = arith.constant dense<0.000000e+00> : vector<8x32xf32>
    %260 = tpu.matmul %257, %259, %cst_93 {dimension_numbers = #tpu.dot_dimension_numbers<[1], [0], [0], [1], [0, 0, 1, 1], [], []>} : vector<8x8xbf16>, vector<8x32xbf16>, vector<8x32xf32> -> vector<8x32xf32>
    %261 = vector.extract_strided_slice %242 {offsets = [3, 0, 0], sizes = [1, 8, 8], strides = [1, 1, 1]} : vector<4x8x8xf32> to vector<1x8x8xf32>
    %262 = vector.shape_cast %261 : vector<1x8x8xf32> to vector<8x8xf32>
    %263 = arith.truncf %262 : vector<8x8xf32> to vector<8x8xbf16>
    %264 = vector.extract_strided_slice %203 {offsets = [0, 96], sizes = [8, 32], strides = [1, 1]} : vector<8x128xf32> to vector<8x32xf32>
    %265 = arith.truncf %264 : vector<8x32xf32> to vector<8x32xbf16>
    %cst_94 = arith.constant dense<0.000000e+00> : vector<8x32xf32>
    %266 = tpu.matmul %263, %265, %cst_94 {dimension_numbers = #tpu.dot_dimension_numbers<[1], [0], [0], [1], [0, 0, 1, 1], [], []>} : vector<8x8xbf16>, vector<8x32xbf16>, vector<8x32xf32> -> vector<8x32xf32>
    %267 = tpu.concatenate %248, %254, %260, %266 in 1 : vector<8x32xf32>, vector<8x32xf32>, vector<8x32xf32>, vector<8x32xf32> -> vector<8x128xf32>
    %268 = arith.truncf %267 : vector<8x128xf32> to vector<8x128xbf16>
    %c1_95 = arith.constant 1 : index
    %c0_96 = arith.constant 0 : index
    %c0_97 = arith.constant 0 : index
    %269 = vector.load %arg7[%c1_95, %c0_96, %c0_97] : memref<2x128x128xbf16, #tpu.memory_space<vmem>>, vector<1x128x128xbf16>
    %270 = vector.shape_cast %269 : vector<1x128x128xbf16> to vector<128x128xbf16>
    %cst_98 = arith.constant dense<0.000000e+00> : vector<8x128xf32>
    %271 = tpu.matmul %268, %270, %cst_98 {dimension_numbers = #tpu.dot_dimension_numbers<[1], [0], [0], [1], [0, 0, 1, 1], [], []>} : vector<8x128xbf16>, vector<128x128xbf16>, vector<8x128xf32> -> vector<8x128xf32>
    %c1_99 = arith.constant 1 : index
    %c0_100 = arith.constant 0 : index
    %c0_101 = arith.constant 0 : index
    %272 = vector.load %arg8[%c1_99, %c0_100, %c0_101] : memref<2x1x128xf32, #tpu.memory_space<vmem>>, vector<1x1x128xf32>
    %273 = vector.shape_cast %272 : vector<1x1x128xf32> to vector<1x128xf32>
    %274 = vector.broadcast %273 : vector<1x128xf32> to vector<8x128xf32>
    %275 = arith.addf %271, %274 : vector<8x128xf32>
    %276 = arith.addf %192, %275 : vector<8x128xf32>
    %c1_102 = arith.constant 1 : index
    %c0_103 = arith.constant 0 : index
    %c0_104 = arith.constant 0 : index
    %277 = vector.load %arg9[%c1_102, %c0_103, %c0_104] : memref<2x1x128xf32, #tpu.memory_space<vmem>>, vector<1x1x128xf32>
    %278 = vector.shape_cast %277 : vector<1x1x128xf32> to vector<1x128xf32>
    %c1_105 = arith.constant 1 : index
    %c0_106 = arith.constant 0 : index
    %c0_107 = arith.constant 0 : index
    %279 = vector.load %arg10[%c1_105, %c0_106, %c0_107] : memref<2x1x128xf32, #tpu.memory_space<vmem>>, vector<1x1x128xf32>
    %280 = vector.shape_cast %279 : vector<1x1x128xf32> to vector<1x128xf32>
    %cst_108 = arith.constant dense<0.000000e+00> : vector<8xf32>
    %281 = vector.multi_reduction <add>, %276, %cst_108 [1] : vector<8x128xf32> to vector<8xf32>
    %282 = vector.shape_cast %281 : vector<8xf32> to vector<8x1xf32>
    %cst_109 = arith.constant 1.280000e+02 : f32
    %283 = vector.broadcast %cst_109 : f32 to vector<8x1xf32>
    %284 = arith.divf %282, %283 : vector<8x1xf32>
    %285 = vector.broadcast %284 : vector<8x1xf32> to vector<8x128xf32>
    %286 = arith.subf %276, %285 : vector<8x128xf32>
    %287 = arith.mulf %286, %286 : vector<8x128xf32>
    %cst_110 = arith.constant dense<0.000000e+00> : vector<8xf32>
    %288 = vector.multi_reduction <add>, %287, %cst_110 [1] : vector<8x128xf32> to vector<8xf32>
    %289 = vector.shape_cast %288 : vector<8xf32> to vector<8x1xf32>
    %cst_111 = arith.constant 1.280000e+02 : f32
    %290 = vector.broadcast %cst_111 : f32 to vector<8x1xf32>
    %291 = arith.divf %289, %290 : vector<8x1xf32>
    %292 = vector.broadcast %284 : vector<8x1xf32> to vector<8x128xf32>
    %293 = arith.subf %276, %292 : vector<8x128xf32>
    %cst_112 = arith.constant 9.99999996E-13 : f32
    %294 = vector.broadcast %cst_112 : f32 to vector<8x1xf32>
    %295 = arith.addf %291, %294 : vector<8x1xf32>
    %296 = math.rsqrt %295 : vector<8x1xf32>
    %297 = vector.broadcast %296 : vector<8x1xf32> to vector<8x128xf32>
    %298 = arith.mulf %293, %297 : vector<8x128xf32>
    %299 = vector.broadcast %278 : vector<1x128xf32> to vector<8x128xf32>
    %300 = arith.mulf %298, %299 : vector<8x128xf32>
    %301 = vector.broadcast %280 : vector<1x128xf32> to vector<8x128xf32>
    %302 = arith.addf %300, %301 : vector<8x128xf32>
    %303 = arith.truncf %302 : vector<8x128xf32> to vector<8x128xbf16>
    %c1_113 = arith.constant 1 : index
    %c0_114 = arith.constant 0 : index
    %c0_115 = arith.constant 0 : index
    %304 = vector.load %arg11[%c1_113, %c0_114, %c0_115] : memref<2x128x256xbf16, #tpu.memory_space<vmem>>, vector<1x128x256xbf16>
    %305 = vector.shape_cast %304 : vector<1x128x256xbf16> to vector<128x256xbf16>
    %cst_116 = arith.constant dense<0.000000e+00> : vector<8x256xf32>
    %306 = tpu.matmul %303, %305, %cst_116 {dimension_numbers = #tpu.dot_dimension_numbers<[1], [0], [0], [1], [0, 0, 1, 1], [], []>} : vector<8x128xbf16>, vector<128x256xbf16>, vector<8x256xf32> -> vector<8x256xf32>
    %c1_117 = arith.constant 1 : index
    %c0_118 = arith.constant 0 : index
    %c0_119 = arith.constant 0 : index
    %307 = vector.load %arg12[%c1_117, %c0_118, %c0_119] : memref<2x1x256xf32, #tpu.memory_space<vmem>>, vector<1x1x256xf32>
    %308 = vector.shape_cast %307 : vector<1x1x256xf32> to vector<1x256xf32>
    %309 = vector.broadcast %308 : vector<1x256xf32> to vector<8x256xf32>
    %310 = arith.addf %306, %309 : vector<8x256xf32>
    %311 = arith.mulf %310, %310 : vector<8x256xf32>
    %312 = arith.mulf %310, %311 : vector<8x256xf32>
    %cst_120 = arith.constant 4.471500e-02 : f32
    %313 = vector.broadcast %cst_120 : f32 to vector<8x256xf32>
    %314 = arith.mulf %313, %312 : vector<8x256xf32>
    %315 = arith.addf %310, %314 : vector<8x256xf32>
    %cst_121 = arith.constant 0.797884583 : f32
    %316 = vector.broadcast %cst_121 : f32 to vector<8x256xf32>
    %317 = arith.mulf %316, %315 : vector<8x256xf32>
    %318 = math.tanh %317 : vector<8x256xf32>
    %cst_122 = arith.constant 1.000000e+00 : f32
    %319 = vector.broadcast %cst_122 : f32 to vector<8x256xf32>
    %320 = arith.addf %319, %318 : vector<8x256xf32>
    %cst_123 = arith.constant 5.000000e-01 : f32
    %321 = vector.broadcast %cst_123 : f32 to vector<8x256xf32>
    %322 = arith.mulf %321, %320 : vector<8x256xf32>
    %323 = arith.mulf %310, %322 : vector<8x256xf32>
    %324 = arith.truncf %323 : vector<8x256xf32> to vector<8x256xbf16>
    %c1_124 = arith.constant 1 : index
    %c0_125 = arith.constant 0 : index
    %c0_126 = arith.constant 0 : index
    %325 = vector.load %arg13[%c1_124, %c0_125, %c0_126] : memref<2x256x128xbf16, #tpu.memory_space<vmem>>, vector<1x256x128xbf16>
    %326 = vector.shape_cast %325 : vector<1x256x128xbf16> to vector<256x128xbf16>
    %cst_127 = arith.constant dense<0.000000e+00> : vector<8x128xf32>
    %327 = tpu.matmul %324, %326, %cst_127 {dimension_numbers = #tpu.dot_dimension_numbers<[1], [0], [0], [1], [0, 0, 1, 1], [], []>} : vector<8x256xbf16>, vector<256x128xbf16>, vector<8x128xf32> -> vector<8x128xf32>
    %c1_128 = arith.constant 1 : index
    %c0_129 = arith.constant 0 : index
    %c0_130 = arith.constant 0 : index
    %328 = vector.load %arg14[%c1_128, %c0_129, %c0_130] : memref<2x1x128xf32, #tpu.memory_space<vmem>>, vector<1x1x128xf32>
    %329 = vector.shape_cast %328 : vector<1x1x128xf32> to vector<1x128xf32>
    %330 = vector.broadcast %329 : vector<1x128xf32> to vector<8x128xf32>
    %331 = arith.addf %327, %330 : vector<8x128xf32>
    %332 = arith.addf %302, %331 : vector<8x128xf32>
    %c1_131 = arith.constant 1 : index
    %c0_132 = arith.constant 0 : index
    %c0_133 = arith.constant 0 : index
    %333 = vector.load %arg15[%c1_131, %c0_132, %c0_133] : memref<2x1x128xf32, #tpu.memory_space<vmem>>, vector<1x1x128xf32>
    %334 = vector.shape_cast %333 : vector<1x1x128xf32> to vector<1x128xf32>
    %c1_134 = arith.constant 1 : index
    %c0_135 = arith.constant 0 : index
    %c0_136 = arith.constant 0 : index
    %335 = vector.load %arg16[%c1_134, %c0_135, %c0_136] : memref<2x1x128xf32, #tpu.memory_space<vmem>>, vector<1x1x128xf32>
    %336 = vector.shape_cast %335 : vector<1x1x128xf32> to vector<1x128xf32>
    %cst_137 = arith.constant dense<0.000000e+00> : vector<8xf32>
    %337 = vector.multi_reduction <add>, %332, %cst_137 [1] : vector<8x128xf32> to vector<8xf32>
    %338 = vector.shape_cast %337 : vector<8xf32> to vector<8x1xf32>
    %cst_138 = arith.constant 1.280000e+02 : f32
    %339 = vector.broadcast %cst_138 : f32 to vector<8x1xf32>
    %340 = arith.divf %338, %339 : vector<8x1xf32>
    %341 = vector.broadcast %340 : vector<8x1xf32> to vector<8x128xf32>
    %342 = arith.subf %332, %341 : vector<8x128xf32>
    %343 = arith.mulf %342, %342 : vector<8x128xf32>
    %cst_139 = arith.constant dense<0.000000e+00> : vector<8xf32>
    %344 = vector.multi_reduction <add>, %343, %cst_139 [1] : vector<8x128xf32> to vector<8xf32>
    %345 = vector.shape_cast %344 : vector<8xf32> to vector<8x1xf32>
    %cst_140 = arith.constant 1.280000e+02 : f32
    %346 = vector.broadcast %cst_140 : f32 to vector<8x1xf32>
    %347 = arith.divf %345, %346 : vector<8x1xf32>
    %348 = vector.broadcast %340 : vector<8x1xf32> to vector<8x128xf32>
    %349 = arith.subf %332, %348 : vector<8x128xf32>
    %cst_141 = arith.constant 9.99999996E-13 : f32
    %350 = vector.broadcast %cst_141 : f32 to vector<8x1xf32>
    %351 = arith.addf %347, %350 : vector<8x1xf32>
    %352 = math.rsqrt %351 : vector<8x1xf32>
    %353 = vector.broadcast %352 : vector<8x1xf32> to vector<8x128xf32>
    %354 = arith.mulf %349, %353 : vector<8x128xf32>
    %355 = vector.broadcast %334 : vector<1x128xf32> to vector<8x128xf32>
    %356 = arith.mulf %354, %355 : vector<8x128xf32>
    %357 = vector.broadcast %336 : vector<1x128xf32> to vector<8x128xf32>
    %358 = arith.addf %356, %357 : vector<8x128xf32>
    %c0_142 = arith.constant 0 : index
    %c0_143 = arith.constant 0 : index
    %c0_144 = arith.constant 0 : index
    %359 = vector.load %arg17[%c0_142, %c0_143, %c0_144] : memref<1x8x128xf32, #tpu.memory_space<vmem>>, vector<1x8x128xf32>
    %360 = vector.shape_cast %359 : vector<1x8x128xf32> to vector<8x128xf32>
    %361 = vector.shape_cast %358 : vector<8x128xf32> to vector<1x8x128xf32>
    tpu.vector_store %arg17[%c0_142, %c0_143, %c0_144], %361 {strides = array<i32>} : memref<1x8x128xf32, #tpu.memory_space<vmem>>, vector<1x8x128xf32>,
    return
  }
  func.func @transform_0(%arg0: i32) -> (i32, i32, i32) {
    %c0_i32 = arith.constant 0 : i32
    %c0_i32_0 = arith.constant 0 : i32
    %c0_i32_1 = arith.constant 0 : i32
    return %arg0, %c0_i32, %c0_i32_0 : i32, i32, i32
  }
  func.func @transform_1(%arg0: i32) -> (i32, i32, i32) {
    %c0_i32 = arith.constant 0 : i32
    %c0_i32_0 = arith.constant 0 : i32
    %c0_i32_1 = arith.constant 0 : i32
    return %arg0, %c0_i32, %c0_i32_0 : i32, i32, i32
  }
  func.func @transform_2(%arg0: i32) -> (i32, i32) {
    %c0_i32 = arith.constant 0 : i32
    %c0_i32_0 = arith.constant 0 : i32
    %c0_i32_1 = arith.constant 0 : i32
    return %c0_i32, %c0_i32_0 : i32, i32
  }
  func.func @transform_3(%arg0: i32) -> (i32, i32) {
    %c0_i32 = arith.constant 0 : i32
    %c0_i32_0 = arith.constant 0 : i32
    %c0_i32_1 = arith.constant 0 : i32
    return %c0_i32, %c0_i32_0 : i32, i32
  }
  func.func @transform_4(%arg0: i32) -> (i32, i32, i32) {
    %c0_i32 = arith.constant 0 : i32
    %c0_i32_0 = arith.constant 0 : i32
    %c0_i32_1 = arith.constant 0 : i32
    %c0_i32_2 = arith.constant 0 : i32
    return %c0_i32, %c0_i32_0, %c0_i32_1 : i32, i32, i32
  }
  func.func @transform_5(%arg0: i32) -> (i32, i32, i32) {
    %c0_i32 = arith.constant 0 : i32
    %c0_i32_0 = arith.constant 0 : i32
    %c0_i32_1 = arith.constant 0 : i32
    %c0_i32_2 = arith.constant 0 : i32
    return %c0_i32, %c0_i32_0, %c0_i32_1 : i32, i32, i32
  }
  func.func @transform_6(%arg0: i32) -> (i32, i32, i32) {
    %c0_i32 = arith.constant 0 : i32
    %c0_i32_0 = arith.constant 0 : i32
    %c0_i32_1 = arith.constant 0 : i32
    %c0_i32_2 = arith.constant 0 : i32
    return %c0_i32, %c0_i32_0, %c0_i32_1 : i32, i32, i32
  }
  func.func @transform_7(%arg0: i32) -> (i32, i32, i32) {
    %c0_i32 = arith.constant 0 : i32
    %c0_i32_0 = arith.constant 0 : i32
    %c0_i32_1 = arith.constant 0 : i32
    %c0_i32_2 = arith.constant 0 : i32
    return %c0_i32, %c0_i32_0, %c0_i32_1 : i32, i32, i32
  }
  func.func @transform_8(%arg0: i32) -> (i32, i32, i32) {
    %c0_i32 = arith.constant 0 : i32
    %c0_i32_0 = arith.constant 0 : i32
    %c0_i32_1 = arith.constant 0 : i32
    %c0_i32_2 = arith.constant 0 : i32
    return %c0_i32, %c0_i32_0, %c0_i32_1 : i32, i32, i32
  }
  func.func @transform_9(%arg0: i32) -> (i32, i32, i32) {
    %c0_i32 = arith.constant 0 : i32
    %c0_i32_0 = arith.constant 0 : i32
    %c0_i32_1 = arith.constant 0 : i32
    %c0_i32_2 = arith.constant 0 : i32
    return %c0_i32, %c0_i32_0, %c0_i32_1 : i32, i32, i32
  }
  func.func @transform_10(%arg0: i32) -> (i32, i32, i32) {
    %c0_i32 = arith.constant 0 : i32
    %c0_i32_0 = arith.constant 0 : i32
    %c0_i32_1 = arith.constant 0 : i32
    %c0_i32_2 = arith.constant 0 : i32
    return %c0_i32, %c0_i32_0, %c0_i32_1 : i32, i32, i32
  }
  func.func @transform_11(%arg0: i32) -> (i32, i32, i32) {
    %c0_i32 = arith.constant 0 : i32
    %c0_i32_0 = arith.constant 0 : i32
    %c0_i32_1 = arith.constant 0 : i32
    %c0_i32_2 = arith.constant 0 : i32
    return %c0_i32, %c0_i32_0, %c0_i32_1 : i32, i32, i32
  }
  func.func @transform_12(%arg0: i32) -> (i32, i32, i32) {
    %c0_i32 = arith.constant 0 : i32
    %c0_i32_0 = arith.constant 0 : i32
    %c0_i32_1 = arith.constant 0 : i32
    %c0_i32_2 = arith.constant 0 : i32
    return %c0_i32, %c0_i32_0, %c0_i32_1 : i32, i32, i32
  }
  func.func @transform_13(%arg0: i32) -> (i32, i32, i32) {
    %c0_i32 = arith.constant 0 : i32
    %c0_i32_0 = arith.constant 0 : i32
    %c0_i32_1 = arith.constant 0 : i32
    %c0_i32_2 = arith.constant 0 : i32
    return %c0_i32, %c0_i32_0, %c0_i32_1 : i32, i32, i32
  }
  func.func @transform_14(%arg0: i32) -> (i32, i32, i32) {
    %c0_i32 = arith.constant 0 : i32
    %c0_i32_0 = arith.constant 0 : i32
    %c0_i32_1 = arith.constant 0 : i32
    %c0_i32_2 = arith.constant 0 : i32
    return %c0_i32, %c0_i32_0, %c0_i32_1 : i32, i32, i32
  }
  func.func @transform_15(%arg0: i32) -> (i32, i32, i32) {
    %c0_i32 = arith.constant 0 : i32
    %c0_i32_0 = arith.constant 0 : i32
    %c0_i32_1 = arith.constant 0 : i32
    %c0_i32_2 = arith.constant 0 : i32
    return %c0_i32, %c0_i32_0, %c0_i32_1 : i32, i32, i32
  }
  func.func @transform_16(%arg0: i32) -> (i32, i32, i32) {
    %c0_i32 = arith.constant 0 : i32
    %c0_i32_0 = arith.constant 0 : i32
    %c0_i32_1 = arith.constant 0 : i32
    return %arg0, %c0_i32, %c0_i32_0 : i32, i32, i32
  }
}

</mosaic_0001>

<bundles_post_ra>
// kernel: bert_classifier_forward.1
= control target key start
LH: loop header
LB: loop body
LE: loop exit
PB: predicated region body
PF: predicated region fallthrough
CT: control target
= control target key end

     0   :  { %s4607_s0 = inlined_call_operand.vmem [shape: f32[2,8,128], index: 0, kind: input, shape index: {}]   ;;  %s4608_s1 = inlined_call_operand.vmem [shape: f32[2,1,8], index: 1, kind: input, shape index: {}]   ;;  %s4609_s2 = inlined_call_operand.vmem [shape: f32[1,128], index: 2, kind: input, shape index: {}]   ;;  %s4610_s3 = inlined_call_operand.vmem [shape: f32[1,128], index: 3, kind: input, shape index: {}]   ;;  %s4611_s4 = inlined_call_operand.hbm [shape: bf16[2,128,384], index: 4, kind: input, shape index: {}]   ;;  %s4612_s5 = inlined_call_operand.vmem [shape: f32[2,1,384], index: 5, kind: input, shape index: {}]   ;;  %s4613_s6 = inlined_call_operand.vmem [shape: bf16[2,128,128], index: 6, kind: input, shape index: {}]   ;;  %s4614_s7 = inlined_call_operand.vmem [shape: f32[2,1,128], index: 7, kind: input, shape index: {}]   ;;  %s4615_s8 = inlined_call_operand.vmem [shape: f32[2,1,128], index: 8, kind: input, shape index: {}]   ;;  %s4616_s9 = inlined_call_operand.vmem [shape: f32[2,1,128], index: 9, kind: input, shape index: {}]   ;;  %s4617_s10 = inlined_call_operand.hbm [shape: bf16[2,128,256], index: 10, kind: input, shape index: {}]   ;;  %s4618_s11 = inlined_call_operand.vmem [shape: f32[2,1,256], index: 11, kind: input, shape index: {}]   ;;  %s4619_s12 = inlined_call_operand.hbm [shape: bf16[2,256,128], index: 12, kind: input, shape index: {}]   ;;  %s4620_s13 = inlined_call_operand.vmem [shape: f32[2,1,128], index: 13, kind: input, shape index: {}]   ;;  %s4621_s14 = inlined_call_operand.vmem [shape: f32[2,1,128], index: 14, kind: input, shape index: {}]   ;;  %s4622_s15 = inlined_call_operand.vmem [shape: f32[2,1,128], index: 15, kind: input, shape index: {}]   ;;  %s4623_s16 = inlined_call_operand.vmem [shape: f32[2,8,128], index: 16, kind: output, shape index: {}]  }
   0x1   :  { %4629 = sst [smem:[#allocation10_spill]] %s4607_s0 }
   0x2   :  { %4630 = sst [smem:[#allocation11_spill]] %s4621_s14 }
   0x3   :  { %4631 = sst [smem:[#allocation12_spill]] %s4622_s15 }
   0x4   :  { %4632 = sst [smem:[#allocation13_spill]] %s4623_s16 }
   0x5   :  { %21 = vsyncpa [#allocation3], 0 }
   0x6   :  { %22 = vsyncpa [#allocation5], 0  ;;  %s4140_s21 = smov 0  }
   0x7 LB: > { %4633 = sst [smem:[#allocation9_spill]] %s4038_s21  ;;  %s4040_s22 = smov [#allocation4]   ;;  %s4038_s21 = sphi %s4140_s21, %s28_s21  }
   0x8   : > { %s451_s23 = sshll.u32 %s4040_s22, 4  ;;  %s4146_s24 = sadd.s32 4294967295, %s4038_s21   ;;  %s4151_s23 = int_to_ptr.vmem [resolvable:$true] %s451_s23 }
   0x9   : > { %p3195_p0 = scmp.ge.s32.totalorder %s4038_s21, 1  ;;  %p405_p1 = scmp.lt.s32.totalorder %s4038_s21, 3 }
   0xa   : > { %p4627_p2 = scmp.eq.s32.totalorder %s4146_s24, 0  ;;  %s4041_s26 = smov [#allocation2]  }
   0xb   : > { %p4153_p3 = pnand %p3195_p0, %p405_p1  ;;  %s423_s27 = sshll.u32 %s4041_s26, 4  ;;  %s4159_s27 = int_to_ptr.vmem [resolvable:$true] %s423_s27 }
   0xc   : > { %s4042_s29 = smov [#allocation6]   ;;  %s3940_s18 = scalar_lea.hbm %s4617_s10, 4096 }
   0xd   : > { %s4634_s25 = scalar_select %p4153_p3, 1, 0 }
   0xe   : > { %p3691_p4 = pneg %p4153_p3  ;;  %s4167_s30 = sshll.u32 %s4042_s29, 4  ;;  %s468_s30 = int_to_ptr.vmem [resolvable:$true] %s4167_s30 }
   0xf   : > { %p3941_p6 = scmp.ne.s32.totalorder %s4617_s10, %s3940_s18  ;;  %p3947_p10 = scmp.lt.u32.totalorder %s3940_s18, %s4617_s10 }
  0x10   : > { %p4163_p5 = pnand %p4627_p2, %p3691_p4 }
  0x12   : > { %p4177_p7 = pneg %p4163_p5 }
  0x14   : > { %p3943_p8 = pnand %p4177_p7, %p3941_p6 }
  0x16   : > { %p3944_p9 = pneg %p3943_p8 }
  0x18   : > { %p3949_p11 = pnand %p3947_p10, %p3944_p9 }
  0x1a   : > { %3952 = shalt.err (!%p3949_p11)
}
  0x1b   : > { %s3953_s0 = scalar_lea.vmem %s4151_s23, 4096  ;;  %p3961_p1 = scmp.lt.s32.totalorder %s4151_s23, %s4151_s23 }
  0x1c   : > { %p3954_p12 = scmp.ne.s32.totalorder %s4151_s23, %s3953_s0  ;;  %p3962_p4 = scmp.lt.s32.totalorder %s3953_s0, %s3953_s0 }
  0x1e   : > { %p3956_p13 = pnand %p3954_p12, %p4177_p7  ;;  %p3963_p6 = por %p3962_p4, %p3961_p1 }
  0x20   : > { %p3957_p0 = pneg %p3956_p13 }
  0x22   : > { %p3964_p8 = pnand %p3963_p6, %p3957_p0 }
  0x24   : > { %3967 = shalt.err (!%p3964_p8)
}
  0x25   : > { %s4043_s17 = smov 128   ;;  %s4044_s18 = smov 8  }
  0x26   : > { %3697 = dma.hbm_to_vmem [thread:$0]  (!%p4163_p5), %s4617_s10, 4096, %s4151_s23, [#allocation5], %s4043_s17, %s4043_s17, %s4044_s18  }
  0x27   : > { %s3968_s21 = scalar_lea.hbm %s4611_s4, 6144 }
  0x28   : > { %p3969_p9 = scmp.ne.s32.totalorder %s4611_s4, %s3968_s21  ;;  %p3975_p12 = scmp.lt.u32.totalorder %s3968_s21, %s4611_s4 }
  0x2a   : > { %p3971_p10 = pnand %p3969_p9, %p4177_p7 }
  0x2c   : > { %p3972_p11 = pneg %p3971_p10 }
  0x2e   : > { %p3977_p13 = pnand %p3975_p12, %p3972_p11 }
  0x30   : > { %3980 = shalt.err (!%p3977_p13)
}
  0x31   : > { %s3981_s23 = scalar_lea.vmem %s4159_s27, 6144  ;;  %p3989_p6 = scmp.lt.s32.totalorder %s4159_s27, %s4159_s27 }
  0x32   : > { %p3982_p0 = scmp.ne.s32.totalorder %s4159_s27, %s3981_s23  ;;  %p3990_p8 = scmp.lt.s32.totalorder %s3981_s23, %s3981_s23 }
  0x34   : > { %p3984_p1 = pnand %p3982_p0, %p4177_p7  ;;  %p3991_p9 = por %p3990_p8, %p3989_p6 }
  0x36   : > { %p3985_p4 = pneg %p3984_p1 }
  0x38   : > { %p3992_p10 = pnand %p3991_p9, %p3985_p4 }
  0x3a   : > { %3995 = shalt.err (!%p3992_p10)
}
  0x3b   : > { %s4045_s15 = smov 192   ;;  %s4046_s14 = smov 12  }
  0x3c   : > { %3694 = dma.hbm_to_vmem [thread:$0]  (!%p4163_p5), %s4611_s4, 6144, %s4159_s27, [#allocation3], %s4045_s15, %s4045_s15, %s4046_s14  }
  0x3d   : > { %s3996_s19 = scalar_lea.hbm %s4619_s12, 4096 }
  0x3e   : > { %p3997_p11 = scmp.ne.s32.totalorder %s4619_s12, %s3996_s19  ;;  %p4003_p0 = scmp.lt.u32.totalorder %s3996_s19, %s4619_s12 }
  0x40   : > { %p3999_p12 = pnand %p3997_p11, %p4177_p7 }
  0x42   : > { %p4000_p13 = pneg %p3999_p12 }
  0x44   : > { %p4005_p1 = pnand %p4003_p0, %p4000_p13 }
  0x46   : > { %4008 = shalt.err (!%p4005_p1)
}
  0x47   : > { %s4009_s23 = scalar_lea.vmem %s468_s30, 4096  ;;  %p4017_p9 = scmp.lt.s32.totalorder %s468_s30, %s468_s30 }
  0x48   : > { %p4010_p4 = scmp.ne.s32.totalorder %s468_s30, %s4009_s23  ;;  %p4018_p10 = scmp.lt.s32.totalorder %s4009_s23, %s4009_s23 }
  0x4a   : > { %p4012_p6 = pnand %p4010_p4, %p4177_p7  ;;  %p4019_p2 = por %p4018_p10, %p4017_p9 }
  0x4c   : > { %p4013_p8 = pneg %p4012_p6 }
  0x4e   : > { %p4020_p3 = pnand %p4019_p2, %p4013_p8 }
  0x50   : > { %4023 = shalt.err (!%p4020_p3)
}
  0x51   : > { %s4047_s27 = smov 64   ;;  %s4048_s15 = smov 4  }
  0x52   : > { %3700 = dma.hbm_to_vmem [thread:$0]  (!%p4163_p5), %s4619_s12, 4096, %s468_s30, [#allocation5], %s4047_s27, %s4047_s27, %s4048_s15  }
  0x53   : > { %p4637_p11 = scmp.ne.s32.totalorder %s4634_s25, 0 }
  0x54   : > { %p4638_p12 = scmp.eq.s32.totalorder (!%p4637_p11), %s4146_s24, 0 }
  0x55   : > { %505 = sbr.rel (%p4637_p11) target bundleno = 5540 (0x15a4), region = 84 }
  0x5c   : > { %4029 = dma.done.wait (%p4638_p12), [#allocation3], 6144   ;;  %p4639_p7 = pmov %p4638_p12 }
  0x5e   : > { %4031 = vsyncadd (%p4639_p7), [#allocation3], 4294961152  ;;  %p4640_p2 = pmov %p4639_p7 }
  0x60   : > { %4033 = dma.done.wait (%p4640_p2), [#allocation5], 8192   ;;  %p4641_p3 = pmov %p4640_p2 }
  0x61   : > { %p564_p13 = scmp.lt.s32.totalorder %s4146_s24, 1  ;;  %s4642_s22 = sld [smem:[#allocation10_spill]]  ;;  %v3730_v1 = vld [vmem:[#allocation2 + $0x4] ss:$12 sps:$4 sm:$0xff]   ;;  %v3732_v2 = vld [vmem:[#allocation2] ss:$12 sps:$4 sm:$0xff]   ;;  %v641_v41 = vlaneseq }
  0x62   : > { %4035 = vsyncadd (%p4641_p3), [#allocation5], 4294959104  ;;  %v4049_v3 = vmov 0.0   ;;  %v3733_v4 = vld [vmem:[#allocation2 + $0x8] ss:$12 sps:$4 sm:$0xff]   ;;  %784 = vmatprep.subr.bf16.mxu0 %v3730_v1  ;;  %v4050_v25 = vmov 0  }
  0x63   : > { %s4648_s24 = smov (!%p564_p13, %s4146_s24), 1  ;;  %3503 = vmatprep.subr.bf16.mxu1 %v4049_v3  ;;  %v3734_v5 = vld [vmem:[#allocation2 + $0x1c] ss:$12 sps:$4 sm:$0xff]   ;;  %v3736_v6 = vld [vmem:[#allocation2 + $0x18] ss:$12 sps:$4 sm:$0xff]   ;;  %785 = vmatpush1.bf16.msra.mxu0 %v3732_v2  ;;  %vm4051_vm0 = vmmov 0  }
  0x64   : > { %s3204_s25 = sshll.u32 %s4648_s24, 3  ;;  %v3737_v7 = vld [vmem:[#allocation2 + $0x20] ss:$12 sps:$4 sm:$0xff]   ;;  %3504 = vmatpush3.bf16.msra.mxu1 %v3733_v4  ;;  %786 = vmatprep.subr.bf16.mxu0 %v3734_v5  ;;  %v3740_v13 = vld [vmem:[#allocation2 + $0x30] ss:$12 sps:$4 sm:$0xff]   ;;  %v4287_v42 = vshrl.u32 %v641_v41, 7  ;;  %s570_s16 = scalar_lea.vmem %s4608_s1, %s4648_s24 }
  0x65   : > { %v3738_v8 = vld [vmem:[#allocation2 + $0x34] ss:$12 sps:$4 sm:$0xff]   ;;  %3505 = vmatprep.subr.bf16.mxu1 %v4049_v3  ;;  %v3741_v14 = vld [vmem:[#allocation2 + $0x38] ss:$12 sps:$4 sm:$0xff]   ;;  %v3745_v17 = vld [vmem:[#allocation2 + $0x50] ss:$12 sps:$4 sm:$0xff]   ;;  %816 = vmatprep.mubr.bf16.mxu0 %v4050_v25 }
  0x66   : > { %v3742_v15 = vld [vmem:[#allocation2 + $0x4c] ss:$12 sps:$4 sm:$0xff]   ;;  %v3744_v16 = vld [vmem:[#allocation2 + $0x48] ss:$12 sps:$4 sm:$0xff]   ;;  %v3746_v18 = vld [vmem:[#allocation2 + $0x64] ss:$12 sps:$4 sm:$0xff]   ;;  %3519 = vmatprep.mubr.msk.bf16.mxu1 %vm4051_vm0, %v4049_v3 }
  0x67   : > { %s567_s21 = scalar_lea.vmem %s4642_s22, %s3204_s25  ;;  %787 = vmatpush1.bf16.msra.mxu0 %v3736_v6  ;;  %v3748_v19 = vld [vmem:[#allocation2 + $0x60] ss:$12 sps:$4 sm:$0xff]   ;;  %v3749_v20 = vld [vmem:[#allocation2 + $0x68] ss:$12 sps:$4 sm:$0xff]   ;;  %v3752_v22 = vld [vmem:[#allocation2 + $0x78] ss:$12 sps:$4 sm:$0xff]  }
  0x68   : > { %v577_v0 = vld [vmem:[%s567_s21] sm:$0xff]  ;;  %3506 = vmatpush3.bf16.msra.mxu1 %v3737_v7  ;;  %788 = vmatprep.subr.bf16.mxu0 %v3738_v8  ;;  %v3750_v21 = vld [vmem:[#allocation2 + $0x7c] ss:$12 sps:$4 sm:$0xff]   ;;  %v3758_v28 = vld [vmem:[#allocation2 + $0xac] ss:$12 sps:$4 sm:$0xff]   ;;  %v651_v43 = vsub.s32 2, %v4287_v42 }
  0x69   : > { %580 = vadd.xlane.f32.xlu0 %v577_v0  ;;  %3507 = vmatprep.subr.bf16.mxu1 %v4049_v3  ;;  %v3753_v23 = vld [vmem:[#allocation2 + $0x80] ss:$12 sps:$4 sm:$0xff]   ;;  %v3756_v26 = vld [vmem:[#allocation2 + $0x90] ss:$12 sps:$4 sm:$0xff]   ;;  %v3757_v27 = vld [vmem:[#allocation2 + $0x98] ss:$12 sps:$4 sm:$0xff]  }
  0x6a   : > { %v3754_v24 = vld [vmem:[#allocation2 + $0x94] ss:$12 sps:$4 sm:$0xff]   ;;  %v3761_v30 = vld [vmem:[#allocation2 + $0xb0] ss:$12 sps:$4 sm:$0xff]   ;;  %v4294_v45 = vsub.s32 1, %v4287_v42  ;;  %v4297_v46 = vsub.s32 0, %v4287_v42 }
  0x6b   : > { %789 = vmatpush1.bf16.msra.mxu0 %v3740_v13  ;;  %v3760_v29 = vld [vmem:[#allocation2 + $0xa8] ss:$12 sps:$4 sm:$0xff]   ;;  %v3206_v35 = vld [vmem:[%s4609_s2] ss:$0 sm:$0xff]  ;;  %vm1130_vm1 = vcmask 1043456   ;;  %vm867_vm2 = vcmask 261120  }
  0x6c   : > { %3508 = vmatpush3.bf16.msra.mxu1 %v3741_v14  ;;  %790 = vmatprep.subr.bf16.mxu0 %v3742_v15  ;;  %v3207_v37 = vld [vmem:[%s4610_s3] ss:$0 sm:$0xff]  ;;  %s4052_s0 = smov 64   ;;  %s4053_s23 = smov 96   ;;  %vm1080_vm3 = vcmask 64512   ;;  %vm1335_vm4 = vcmask 523264  }
  0x6d   : > { %3509 = vmatprep.subr.bf16.mxu1 %v4049_v3  ;;  %v639_v44 = vld [vmem:[%s4612_s5] sm:$0x7]  ;;  %s4054_s27 = smov 32   ;;  %vm1337_vm5 = vcmask 785408   ;;  %s4643_s22 = sld [smem:[#allocation11_spill]] }
  0x6e   : > { %v652_v47 = vrot.slane %v639_v44, %v651_v43  ;;  %v648_v48 = vrot.slane %v639_v44, %v4294_v45  ;;  %v644_v51 = vrot.slane %v639_v44, %v4297_v46  ;;  %s4644_s18 = sld [smem:[#allocation12_spill]] }
  0x6f   : > { %791 = vmatpush1.bf16.msra.mxu0 %v3744_v16 }
  0x70   : > { %3510 = vmatpush3.bf16.msra.mxu1 %v3745_v17  ;;  %792 = vmatprep.subr.bf16.mxu0 %v3746_v18 }
  0x71   : > { %3511 = vmatprep.subr.bf16.mxu1 %v4049_v3 }
  0x73   : > { %793 = vmatpush1.bf16.msra.mxu0 %v3748_v19 }
  0x74   : > { %3512 = vmatpush3.bf16.msra.mxu1 %v3749_v20  ;;  %794 = vmatprep.subr.bf16.mxu0 %v3750_v21 }
  0x75   : > { %3513 = vmatprep.subr.bf16.mxu1 %v4049_v3 }
  0x77   : > { %795 = vmatpush1.bf16.msra.mxu0 %v3752_v22 }
  0x78   : > { %3514 = vmatpush3.bf16.msra.mxu1 %v3753_v23  ;;  %796 = vmatprep.subr.bf16.mxu0 %v3754_v24 }
  0x79   : > { %3515 = vmatprep.subr.bf16.mxu1 %v4049_v3 }
  0x7b   : > { %797 = vmatpush1.bf16.msra.mxu0 %v3756_v26 }
  0x7c   : > { %3516 = vmatpush3.bf16.msra.mxu1 %v3757_v27  ;;  %798 = vmatprep.subr.bf16.mxu0 %v3758_v28 }
  0x7d   : > { %3517 = vmatprep.subr.bf16.mxu1 %v4049_v3 }
  0x7f   : > { %799 = vmatpush1.bf16.msra.mxu0 %v3760_v29 }
  0x80   : > { %3518 = vmatpush3.bf16.msra.mxu1 %v3761_v30  ;;  %3547 = vmatprep.subr.bf16.mxu0 %v4049_v3 }
  0x81   : > { %3523 = vmatprep.subr.bf16.mxu1 %v4049_v3 }
  0xf6   : > { %v581_v9 = vpop.xlane.xlu0 %580 }
  0xf7   : > { %v583_v10 = vmul.f32 0.0078125, %v581_v9 }
  0xf9   : > { %v584_v11 = vsub.f32 %v577_v0, %v583_v10 }
  0xfb   : > { %v585_v12 = vmul.f32 %v584_v11, %v584_v11 }
  0xfd   : > { %586 = vadd.xlane.f32.xlu0 %v585_v12  ;;  %v4338_v12 = vld [vmem:[%s570_s16] ss:$0 sm:$0xff] }
 0x18a   : > { %v587_v31 = vpop.xlane.xlu0 %586 }
 0x18b   : > { %v588_v32 = vmul.f32 0.0078125, %v587_v31 }
 0x18d   : > { %v589_v33 = vadd.f32 1e-12, %v588_v32 }
 0x18f   : > { %3890 = vrsqrt.f32 %v589_v33 }
 0x199   : > { %v3891_v34 = vpop.eup %3890 }
 0x19a   : > { %v591_v36 = vmul.f32 %v3891_v34, %v584_v11 }
 0x19c   : > { %v598_v38 = vmul.f32 %v3206_v35, %v591_v36 }
 0x19e   : > { %v4279_v39 = vadd.f32 %v3207_v37, %v598_v38 }
 0x1a0   : > { %v606_v40 = vpack.c.bf16 %v4279_v39, %v4279_v39 }
 0x1a2   : > { %817 = vmatmul.mubr.bf16.vlgmr.msra.gmra.mrb[0].mxu0 %v606_v40  ;;  %3520 = vmatmul.mubr.bf16.vlgmr.msra.gmra.mrb[0].mxu1 %v606_v40 }
 0x1a3   : > { %3525 = vmatprep.mubr.msk.bf16.mxu1 %vm4051_vm0, %v4049_v3  ;;  %3549 = vmatprep.mubr.msk.bf16.mxu0 %vm4051_vm0, %v4049_v3 }
 0x275   : > { %v818_v49 = vpop.f32.mrb[0].mxu0  ;;  %v859_v50 = vpop.f32.mrb[0].mxu1 }
 0x276   : > { %v860_v52 = vadd.f32 %v859_v50, %v652_v47  ;;  %v820_v53 = vpop.f32.mrb[1].mxu0  ;;  %v3521_v54 = vpop.f32.mrb[1].mxu1  ;;  %v819_v62 = vadd.f32 %v818_v49, %v644_v51 }
 0x277   : > { %v821_v55 = vadd.f32 %v820_v53, %v648_v48  ;;  %v822_v56 = vpop.f32.mrb[2].mxu0  ;;  %v862_v57 = vpop.f32.mrb[2].mxu1 }
 0x278   : > { %v4303_v58 = vpack.c.bf16 %v860_v52, %v860_v52  ;;  %v823_v59 = vpop.f32.mrb[3].mxu0  ;;  %v3522_v60 = vpop.f32.mrb[3].mxu1  ;;  %v865_v1 = vpack.c.bf16 %v819_v62, %v819_v62 }
 0x279   : > { %v866_v61 = vpack.c.bf16 %v821_v55, %v821_v55 }
 0x27a   : > { %v1132_v63 = vsel %vm1130_vm1, %v4303_v58, 0 }
 0x27b   : > { %3548 = vmatpush3.bf16.msra.mxu0 %v1132_v63  ;;  %968 = vrot.lane.b32.xlu0 %v866_v61, %s4052_s0  ;;  %v872_v0 = vsel %vm867_vm2, %v866_v61, 0 }
 0x27c   : > { %918 = vrot.lane.b32.xlu1 %v866_v61, %s4053_s23  ;;  %3524 = vmatpush3.bf16.xpose.msra.mxu1 %v872_v0 }
 0x27d   : > { %3529 = vmatprep.subr.bf16.mxu1 %v4049_v3  ;;  %3559 = vmatprep.subr.bf16.mxu0 %v4049_v3 }
 0x280   : > { %915 = vrot.lane.b32.xlu1 %v865_v1, %s4053_s23 }
 0x283   : > { %3526 = vmatmul.mubr.msk.bf16.vlgmr.msra.gmra.mrb[4].mxu1 %vm867_vm2, %v865_v1 }
 0x284   : > { %966 = vrot.lane.b32.xlu1 %v865_v1, %s4052_s0  ;;  %3531 = vmatprep.mubr.msk.bf16.mxu1 %vm4051_vm0, %v4049_v3 }
 0x288   : > { %1018 = vrot.lane.b32.xlu1 %v866_v61, %s4054_s27 }
 0x28c   : > { %1016 = vrot.lane.b32.xlu1 %v865_v1, %s4054_s27 }
 0x2ed   : > { %v969_v6 = vpop.permute.xlu0 %968 }
 0x2ee   : > { %v919_v2 = vpop.permute.xlu1 %918  ;;  %v974_v8 = vsel %vm867_vm2, %v969_v6, 0 }
 0x2ef   : > { %v924_v4 = vsel %vm867_vm2, %v919_v2, 0 }
 0x2f0   : > { %3530 = vmatpush3.bf16.xpose.msra.mxu1 %v924_v4 }
 0x2f1   : > { %3535 = vmatprep.subr.bf16.mxu1 %v4049_v3 }
 0x2f2   : > { %v916_v5 = vpop.permute.xlu1 %915 }
 0x2f6   : > { %v967_v7 = vpop.permute.xlu1 %966 }
 0x2f7   : > { %3532 = vmatmul.mubr.msk.bf16.vlgmr.msra.gmra.mrb[8].mxu1 %vm867_vm2, %v916_v5 }
 0x2f8   : > { %3536 = vmatpush3.bf16.xpose.msra.mxu1 %v974_v8  ;;  %3537 = vmatprep.mubr.msk.bf16.mxu1 %vm4051_vm0, %v4049_v3 }
 0x2f9   : > { %3541 = vmatprep.subr.bf16.mxu1 %v4049_v3 }
 0x2fa   : > { %v1019_v9 = vpop.permute.xlu1 %1018 }
 0x2fb   : > { %v1024_v10 = vsel %vm867_vm2, %v1019_v9, 0 }
 0x2fe   : > { %v1017_v11 = vpop.permute.xlu1 %1016 }
 0x2ff   : > { %3538 = vmatmul.mubr.msk.bf16.vlgmr.msra.gmra.mrb[12].mxu1 %vm867_vm2, %v967_v7 }
 0x300   : > { %3542 = vmatpush3.bf16.xpose.msra.mxu1 %v1024_v10  ;;  %3543 = vmatprep.mubr.msk.bf16.mxu1 %vm4051_vm0, %v4049_v3 }
 0x301   : > { %3553 = vmatprep.subr.bf16.mxu1 %v4049_v3 }
 0x307   : > { %3544 = vmatmul.mubr.msk.bf16.vlgmr.msra.gmra.mrb[16].mxu1 %vm867_vm2, %v1017_v11 }
 0x308   : > { %3555 = vmatprep.mubr.msk.bf16.mxu1 %vm4051_vm0, %v4049_v3 }
 0x356   : > { %v908_v13 = vpop.f32.mrb[4].mxu1 }
 0x357   : > { %v1066_v14 = vmul.f32 0.17677669, %v908_v13  ;;  %v3527_v15 = vpop.f32.mrb[5].mxu1 }
 0x358   : > { %v911_v16 = vpop.f32.mrb[6].mxu1 }
 0x359   : > { %v3528_v17 = vpop.f32.mrb[7].mxu1  ;;  %v1076_v18 = vadd.f32 %v4338_v12, %v1066_v14 }
 0x35b   : > { %v1081_v19 = vsel %vm1080_vm3, %v1076_v18, -inf }
 0x35c   : > { %1082 = vmax.xlane.f32.xlu1 %v1081_v19 }
 0x3ca   : > { %v960_v20 = vpop.f32.mrb[8].mxu1 }
 0x3cb   : > { %v1067_v21 = vmul.f32 0.17677669, %v960_v20  ;;  %v3533_v22 = vpop.f32.mrb[9].mxu1 }
 0x3cc   : > { %v963_v23 = vpop.f32.mrb[10].mxu1 }
 0x3cd   : > { %v3534_v24 = vpop.f32.mrb[11].mxu1  ;;  %v1077_v26 = vadd.f32 %v4338_v12, %v1067_v21 }
 0x3cf   : > { %v1084_v27 = vsel %vm1080_vm3, %v1077_v26, -inf }
 0x3d0   : > { %1085 = vmax.xlane.f32.xlu0 %v1084_v27 }
 0x3d2   : > { %v1010_v28 = vpop.f32.mrb[12].mxu1 }
 0x3d3   : > { %v1068_v29 = vmul.f32 0.17677669, %v1010_v28  ;;  %v3539_v30 = vpop.f32.mrb[13].mxu1 }
 0x3d4   : > { %v1013_v31 = vpop.f32.mrb[14].mxu1 }
 0x3d5   : > { %v3540_v32 = vpop.f32.mrb[15].mxu1  ;;  %v1078_v33 = vadd.f32 %v4338_v12, %v1068_v29 }
 0x3d6   : > { %v3762_v32 = vld [vmem:[%s4613_s6] sm:$0xff]  }
 0x3d7   : > { %v1087_v34 = vsel %vm1080_vm3, %v1078_v33, -inf }
 0x3d8   : > { %1088 = vmax.xlane.f32.xlu1 %v1087_v34 }
 0x3da   : > { %v1060_v35 = vpop.f32.mrb[16].mxu1 }
 0x3db   : > { %v1069_v36 = vmul.f32 0.17677669, %v1060_v35  ;;  %v3545_v37 = vpop.f32.mrb[17].mxu1 }
 0x3dc   : > { %v1063_v38 = vpop.f32.mrb[18].mxu1 }
 0x3dd   : > { %v3546_v40 = vpop.f32.mrb[19].mxu1  ;;  %v1079_v41 = vadd.f32 %v4338_v12, %v1069_v36  ;;  %v3764_v36 = vld [vmem:[%s4613_s6 + $0x10] sm:$0xff]  }
 0x3de   : > { %v3765_v40 = vld [vmem:[%s4613_s6 + $0x18] sm:$0xff]  }
 0x3df   : > { %v1090_v44 = vsel %vm1080_vm3, %v1079_v41, -inf }
 0x3e0   : > { %1091 = vmax.xlane.f32.xlu1 %v1090_v44 }
 0x3e9   : > { %v1083_v47 = vpop.xlane.xlu1 %1082 }
 0x3ea   : > { %v1093_v48 = vsub.f32 %v1076_v18, %v1083_v47 }
 0x3ec   : > { %v1097_v49 = vmul.f32 1.442695, %v1093_v48  ;;  %v3766_v48 = vld [vmem:[%s4613_s6 + $0x20] sm:$0xff]  }
 0x3ee   : > { %3892 = vpow2.f32 %v1097_v49 }
 0x3f8   : > { %v3893_v50 = vpop.eup %3892 }
 0x3f9   : > { %v1105_v51 = vsel %vm1080_vm3, %v3893_v50, 0.0 }
 0x3fa   : > { %1106 = vadd.xlane.f32.xlu0 %v1105_v51  ;;  %v3768_v51 = vld [vmem:[%s4613_s6 + $0x30] sm:$0xff]  }
 0x45d   : > { %v1086_v52 = vpop.xlane.xlu0 %1085 }
 0x45e   : > { %v1094_v53 = vsub.f32 %v1077_v26, %v1086_v52  ;;  %v3769_v52 = vld [vmem:[%s4613_s6 + $0x38] sm:$0xff]  }
 0x460   : > { %v1099_v54 = vmul.f32 1.442695, %v1094_v53 }
 0x462   : > { %3894 = vpow2.f32 %v1099_v54 }
 0x465   : > { %v1089_v55 = vpop.xlane.xlu1 %1088 }
 0x466   : > { %v1095_v56 = vsub.f32 %v1078_v33, %v1089_v55  ;;  %v3763_v33 = vld [vmem:[%s4613_s6 + $0x8] sm:$0xff]  }
 0x468   : > { %v1101_v57 = vmul.f32 1.442695, %v1095_v56 }
 0x46a   : > { %3896 = vpow2.f32 %v1101_v57 }
 0x46c   : > { %v3895_v59 = vpop.eup %3894 }
 0x46d   : > { %v1108_v60 = vsel %vm1080_vm3, %v3895_v59, 0.0  ;;  %v1092_v0 = vpop.xlane.xlu1 %1091 }
 0x46e   : > { %1109 = vadd.xlane.f32.xlu1 %v1108_v60  ;;  %v1096_v1 = vsub.f32 %v1079_v41, %v1092_v0 }
 0x470   : > { %v1103_v2 = vmul.f32 1.442695, %v1096_v1  ;;  %v3241_v1 = vld [vmem:[%s4614_s7] ss:$0 sm:$0xff] }
 0x474   : > { %v3897_v61 = vpop.eup %3896 }
 0x475   : > { %v1111_v62 = vsel %vm1080_vm3, %v3897_v61, 0.0 }
 0x476   : > { %1112 = vadd.xlane.f32.xlu0 %v1111_v62 }
 0x47f   : > { %1225 = vrot.lane.b32.xlu1 %v4303_v58, %s4052_s0 }
 0x487   : > { %v1107_v63 = vpop.xlane.xlu0 %1106 }
 0x488   : > { %3898 = vrcp.f32 %v1107_v63 }
 0x489   : > { %3900 = vpow2.f32 %v1103_v2 }
 0x48c   : > { %1176 = vrot.lane.b32.xlu0 %v4303_v58, %s4053_s23 }
 0x492   : > { %v3899_v4 = vpop.eup %3898 }
 0x493   : > { %v1121_v5 = vmul.f32 %v3899_v4, %v3893_v50  ;;  %v3901_v7 = vpop.eup %3900  ;;  %v3767_v50 = vld [vmem:[%s4613_s6 + $0x28] sm:$0xff]  }
 0x494   : > { %v1114_v8 = vsel %vm1080_vm3, %v3901_v7, 0.0 }
 0x495   : > { %v1125_v6 = vpack.c.bf16 %v1121_v5, %v1121_v5 }
 0x497   : > { %3550 = vmatmul.mubr.msk.bf16.vlgmr.msra.gmra.mrb[4].mxu0 %vm1080_vm3, %v1125_v6 }
 0x498   : > { %3561 = vmatprep.mubr.msk.bf16.mxu0 %vm4051_vm0, %v4049_v3 }
 0x4a3   : > { %1115 = vadd.xlane.f32.xlu1 %v1114_v8 }
 0x4b4   : > { %1274 = vrot.lane.b32.xlu1 %v4303_v58, %s4054_s27 }
 0x4fb   : > { %v1110_v9 = vpop.xlane.xlu1 %1109 }
 0x4fc   : > { %3902 = vrcp.f32 %v1110_v9  ;;  %v3770_v9 = vld [vmem:[#allocation4] ss:$8 sps:$4 sm:$0xff]  }
 0x4ff   : > { %v1226_v10 = vpop.permute.xlu1 %1225 }
 0x500   : > { %v1231_v11 = vsel %vm1130_vm1, %v1226_v10, 0  ;;  %v3772_v10 = vld [vmem:[#allocation4 + $0x4] ss:$8 sps:$4 sm:$0xff]  }
 0x501   : > { %3560 = vmatpush3.bf16.msra.mxu0 %v1231_v11  ;;  %v3775_v11 = vld [vmem:[#allocation4 + $0x14] ss:$8 sps:$4 sm:$0xff]  }
 0x502   : > { %3571 = vmatprep.subr.bf16.mxu0 %v4049_v3 }
 0x503   : > { %v1113_v13 = vpop.xlane.xlu0 %1112 }
 0x504   : > { %3904 = vrcp.f32 %v1113_v13  ;;  %v3773_v13 = vld [vmem:[#allocation4 + $0x10] ss:$8 sps:$4 sm:$0xff]  }
 0x506   : > { %v3903_v14 = vpop.eup %3902 }
 0x507   : > { %v1122_v15 = vmul.f32 %v3903_v14, %v3895_v59  ;;  %v1177_v16 = vpop.permute.xlu0 %1176  ;;  %v3778_v14 = vld [vmem:[#allocation4 + $0x24] ss:$8 sps:$4 sm:$0xff]  }
 0x508   : > { %v1182_v17 = vsel %vm1130_vm1, %v1177_v16, 0 }
 0x509   : > { %3554 = vmatpush3.bf16.msra.mxu1 %v1182_v17  ;;  %v1174_v18 = vpack.c.bf16 %v1122_v15, %v1122_v15  ;;  %v3776_v15 = vld [vmem:[#allocation4 + $0x20] ss:$8 sps:$4 sm:$0xff]  }
 0x50a   : > { %3565 = vmatprep.subr.bf16.mxu1 %v4049_v3 }
 0x50c   : > { %3556 = vmatmul.mubr.msk.bf16.vlgmr.msra.gmra.mrb[20].mxu1 %vm1080_vm3, %v1174_v18 }
 0x50d   : > { %3567 = vmatprep.mubr.msk.bf16.mxu1 %vm4051_vm0, %v4049_v3 }
 0x50e   : > { %v3905_v58 = vpop.eup %3904 }
 0x50f   : > { %v1123_v19 = vmul.f32 %v3905_v58, %v3897_v61 }
 0x511   : > { %v1224_v20 = vpack.c.bf16 %v1123_v19, %v1123_v19  ;;  %v3781_v19 = vld [vmem:[#allocation4 + $0x34] ss:$8 sps:$4 sm:$0xff]  }
 0x513   : > { %3562 = vmatmul.mubr.msk.bf16.vlgmr.msra.gmra.mrb[8].mxu0 %vm1080_vm3, %v1224_v20  ;;  %v3784_v20 = vld [vmem:[#allocation4 + $0x44] ss:$8 sps:$4 sm:$0xff]  }
 0x514   : > { %3587 = vmatprep.mubr.msk.bf16.mxu0 %vm4051_vm0, %v4049_v3  ;;  %3572 = vmatpush3.bf16.msra.mxu0 %v3762_v32 }
 0x515   : > { %3573 = vmatprep.subr.bf16.mxu0 %v4049_v3 }
 0x518   : > { %3574 = vmatpush3.bf16.msra.mxu0 %v3763_v33  ;;  %v3250_v33 = vld [vmem:[%s4615_s8] ss:$0 sm:$0xff] }
 0x519   : > { %3575 = vmatprep.subr.bf16.mxu0 %v4049_v3 }
 0x51c   : > { %3576 = vmatpush3.bf16.msra.mxu0 %v3764_v36 }
 0x51d   : > { %3577 = vmatprep.subr.bf16.mxu0 %v4049_v3 }
 0x520   : > { %3578 = vmatpush3.bf16.msra.mxu0 %v3765_v40  ;;  %v3794_v40 = vld [vmem:[#allocation6 + $0x40] sm:$0xff]  }
 0x521   : > { %3579 = vmatprep.subr.bf16.mxu0 %v4049_v3 }
 0x524   : > { %3580 = vmatpush3.bf16.msra.mxu0 %v3766_v48  ;;  %v3798_v48 = vld [vmem:[#allocation6 + $0x50] sm:$0xff]  }
 0x525   : > { %3581 = vmatprep.subr.bf16.mxu0 %v4049_v3 }
 0x528   : > { %3582 = vmatpush3.bf16.msra.mxu0 %v3767_v50  ;;  %v3800_v50 = vld [vmem:[#allocation6 + $0x58] sm:$0xff]  }
 0x529   : > { %3583 = vmatprep.subr.bf16.mxu0 %v4049_v3 }
 0x52c   : > { %3584 = vmatpush3.bf16.msra.mxu0 %v3768_v51  ;;  %v3801_v51 = vld [vmem:[#allocation6 + $0x18] sm:$0xff]  }
 0x52d   : > { %3585 = vmatprep.subr.bf16.mxu0 %v4049_v3 }
 0x530   : > { %v1116_v21 = vpop.xlane.xlu1 %1115  ;;  %3586 = vmatpush3.bf16.msra.mxu0 %v3769_v52  ;;  %v3802_v52 = vld [vmem:[#allocation6 + $0x60] sm:$0xff]  }
 0x531   : > { %3906 = vrcp.f32 %v1116_v21  ;;  %v3782_v21 = vld [vmem:[#allocation4 + $0x40] ss:$8 sps:$4 sm:$0xff]   ;;  %3425 = vmatprep.subr.bf16.mxu0 %v3794_v40 }
 0x532   : > { %v3816_v40 = vld [vmem:[#allocation2 + $0xdc] ss:$12 sps:$4 sm:$0xff]  }
 0x534   : > { %v1275_v22 = vpop.permute.xlu1 %1274 }
 0x535   : > { %v1280_v23 = vsel %vm1130_vm1, %v1275_v22, 0  ;;  %v3787_v22 = vld [vmem:[#allocation4 + $0x54] ss:$8 sps:$4 sm:$0xff]  }
 0x536   : > { %3566 = vmatpush3.bf16.msra.mxu1 %v1280_v23  ;;  %v3785_v23 = vld [vmem:[#allocation4 + $0x50] ss:$8 sps:$4 sm:$0xff]  }
 0x537   : > { %1588 = vmatprep.subr.bf16.mxu1 %v3772_v10 }
 0x53b   : > { %v3907_v24 = vpop.eup %3906 }
 0x53c   : > { %v1124_v26 = vmul.f32 %v3907_v24, %v3901_v7  ;;  %v3790_v24 = vld [vmem:[#allocation4 + $0x64] ss:$8 sps:$4 sm:$0xff]  }
 0x53e   : > { %v1273_v27 = vpack.c.bf16 %v1124_v26, %v1124_v26  ;;  %v3788_v26 = vld [vmem:[#allocation4 + $0x60] ss:$8 sps:$4 sm:$0xff]  }
 0x540   : > { %3568 = vmatmul.mubr.msk.bf16.vlgmr.msra.gmra.mrb[24].mxu1 %vm1080_vm3, %v1273_v27  ;;  %v3793_v27 = vld [vmem:[#allocation4 + $0x74] ss:$8 sps:$4 sm:$0xff]  }
 0x541   : > { %1620 = vmatprep.mubr.bf16.mxu1 %v4050_v25  ;;  %1589 = vmatpush1.bf16.msra.mxu1 %v3770_v9 }
 0x542   : > { %1590 = vmatprep.subr.bf16.mxu1 %v3775_v11 }
 0x545   : > { %1591 = vmatpush1.bf16.msra.mxu1 %v3773_v13 }
 0x546   : > { %1592 = vmatprep.subr.bf16.mxu1 %v3778_v14 }
 0x549   : > { %1593 = vmatpush1.bf16.msra.mxu1 %v3776_v15 }
 0x54a   : > { %1594 = vmatprep.subr.bf16.mxu1 %v3781_v19 }
 0x56a   : > { %v1168_v28 = vpop.f32.mrb[4].mxu0 }
 0x56b   : > { %v3551_v29 = vpop.f32.mrb[5].mxu0 }
 0x56c   : > { %v1171_v30 = vpop.f32.mrb[6].mxu0 }
 0x56d   : > { %v3552_v31 = vpop.f32.mrb[7].mxu0 }
 0x5df   : > { %v1218_v34 = vpop.f32.mrb[20].mxu1 }
 0x5e0   : > { %1323 = vrot.lane.b32.xlu0 %v1218_v34, %s4054_s27  ;;  %v3557_v35 = vpop.f32.mrb[21].mxu1 }
 0x5e1   : > { %v1221_v37 = vpop.f32.mrb[22].mxu1  ;;  %v3251_v35 = vld [vmem:[%s4616_s9] ss:$0 sm:$0xff] }
 0x5e2   : > { %v3558_v38 = vpop.f32.mrb[23].mxu1 }
 0x5e6   : > { %v1267_v41 = vpop.f32.mrb[8].mxu0 }
 0x5e7   : > { %1327 = vrot.lane.b32.xlu1 %v1267_v41, %s4052_s0  ;;  %v3563_v44 = vpop.f32.mrb[9].mxu0  ;;  %v3795_v41 = vld [vmem:[#allocation6] sm:$0xff]  }
 0x5e8   : > { %v1270_v47 = vpop.f32.mrb[10].mxu0  ;;  %v3796_v44 = vld [vmem:[#allocation6 + $0x48] sm:$0xff]  }
 0x5e9   : > { %v3564_v49 = vpop.f32.mrb[11].mxu0  ;;  %v3797_v47 = vld [vmem:[#allocation6 + $0x8] sm:$0xff]  }
 0x5ea   : > { %v3799_v49 = vld [vmem:[#allocation6 + $0x10] sm:$0xff]  }
 0x613   : > { %v1316_v53 = vpop.f32.mrb[24].mxu1 }
 0x614   : > { %1331 = vrot.lane.b32.xlu0 %v1316_v53, %s4053_s23  ;;  %v3569_v54 = vpop.f32.mrb[25].mxu1  ;;  %v3803_v53 = vld [vmem:[#allocation6 + $0x20] sm:$0xff]  }
 0x615   : > { %v1319_v55 = vpop.f32.mrb[26].mxu1  ;;  %v3804_v54 = vld [vmem:[#allocation6 + $0x68] sm:$0xff]  }
 0x616   : > { %v3570_v56 = vpop.f32.mrb[27].mxu1  ;;  %v3805_v55 = vld [vmem:[#allocation6 + $0x28] sm:$0xff]  }
 0x617   : > { %v3806_v56 = vld [vmem:[#allocation6 + $0x70] sm:$0xff]  }
 0x652   : > { %v1324_v57 = vpop.permute.xlu0 %1323 }
 0x653   : > { %v1334_v60 = vsel %vm867_vm2, %v1168_v28, %v1324_v57  ;;  %v3791_v28 = vld [vmem:[#allocation4 + $0x70] ss:$8 sps:$4 sm:$0xff]  }
 0x654   : > { %v3807_v57 = vld [vmem:[#allocation6 + $0x30] sm:$0xff]  }
 0x659   : > { %v1328_v59 = vpop.permute.xlu1 %1327 }
 0x65a   : > { %v1336_v61 = vsel %vm1335_vm4, %v1334_v60, %v1328_v59  ;;  %v3808_v59 = vld [vmem:[#allocation6 + $0x78] sm:$0xff]  }
 0x65b   : > { %v3809_v60 = vld [vmem:[#allocation6 + $0x38] sm:$0xff]  }
 0x686   : > { %v1332_v62 = vpop.permute.xlu0 %1331 }
 0x687   : > { %v1338_v63 = vsel %vm1337_vm5, %v1336_v61, %v1332_v62  ;;  %v1496_v61 = vld [vmem:[%s4618_s11] sm:$0x3] }
 0x688   : > { %v1339_v0 = vpack.c.bf16 %v1338_v63, %v1338_v63  ;;  %v1501_v62 = vrot.slane %v1496_v61, %v4297_v46  ;;  %v1505_v63 = vrot.slane %v1496_v61, %v4294_v45  ;;  %v3830_v61 = vld [vmem:[#allocation2 + $0x138] ss:$12 sps:$4 sm:$0xff]  }
 0x68a   : > { %3588 = vmatmul.mubr.bf16.vlgmr.msra.gmra.mrb[12].mxu0 %v1339_v0 }
 0x68b   : > { %3426 = vmatpush3.bf16.msra.mxu0 %v3795_v41  ;;  %v3817_v41 = vld [vmem:[#allocation2 + $0xe0] ss:$12 sps:$4 sm:$0xff]  }
 0x68c   : > { %3427 = vmatprep.subr.bf16.mxu0 %v3796_v44  ;;  %v3814_v44 = vld [vmem:[#allocation2 + $0xd8] ss:$12 sps:$4 sm:$0xff]  }
 0x68f   : > { %3428 = vmatpush3.bf16.msra.mxu0 %v3797_v47  ;;  %v3820_v47 = vld [vmem:[#allocation2 + $0xf4] ss:$12 sps:$4 sm:$0xff]  }
 0x690   : > { %3429 = vmatprep.subr.bf16.mxu0 %v3798_v48  ;;  %v3818_v48 = vld [vmem:[#allocation2 + $0xf0] ss:$12 sps:$4 sm:$0xff]  }
 0x693   : > { %3430 = vmatpush3.bf16.msra.mxu0 %v3799_v49 }
 0x694   : > { %3431 = vmatprep.subr.bf16.mxu0 %v3800_v50 }
 0x697   : > { %3432 = vmatpush3.bf16.msra.mxu0 %v3801_v51 }
 0x698   : > { %3433 = vmatprep.subr.bf16.mxu0 %v3802_v52  ;;  %v3821_v52 = vld [vmem:[#allocation2 + $0xf8] ss:$12 sps:$4 sm:$0xff]  }
 0x69b   : > { %3434 = vmatpush3.bf16.msra.mxu0 %v3803_v53  ;;  %v3824_v53 = vld [vmem:[#allocation2 + $0x10c] ss:$12 sps:$4 sm:$0xff]  }
 0x69c   : > { %3435 = vmatprep.subr.bf16.mxu0 %v3804_v54  ;;  %v3822_v54 = vld [vmem:[#allocation2 + $0x108] ss:$12 sps:$4 sm:$0xff]  }
 0x69f   : > { %3436 = vmatpush3.bf16.msra.mxu0 %v3805_v55  ;;  %v3825_v55 = vld [vmem:[#allocation2 + $0x110] ss:$12 sps:$4 sm:$0xff]  }
 0x6a0   : > { %3437 = vmatprep.subr.bf16.mxu0 %v3806_v56  ;;  %v3828_v56 = vld [vmem:[#allocation2 + $0x124] ss:$12 sps:$4 sm:$0xff]  }
 0x6a3   : > { %3438 = vmatpush3.bf16.msra.mxu0 %v3807_v57  ;;  %v3826_v57 = vld [vmem:[#allocation2 + $0x120] ss:$12 sps:$4 sm:$0xff]  }
 0x6a4   : > { %3439 = vmatprep.subr.bf16.mxu0 %v3808_v59  ;;  %v3829_v59 = vld [vmem:[#allocation2 + $0x128] ss:$12 sps:$4 sm:$0xff]  }
 0x6a7   : > { %3440 = vmatpush3.bf16.msra.mxu0 %v3809_v60  ;;  %v3832_v60 = vld [vmem:[#allocation2 + $0x13c] ss:$12 sps:$4 sm:$0xff]  }
 0x6a8   : > { %3591 = vmatprep.subr.bf16.mxu0 %v4049_v3 }
 0x75d   : > { %v1445_v2 = vpop.f32.mrb[12].mxu0 }
 0x75e   : > { %v1446_v4 = vadd.f32 %v3241_v1, %v1445_v2  ;;  %v3589_v5 = vpop.f32.mrb[13].mxu0 }
 0x75f   : > { %v1448_v6 = vpop.f32.mrb[14].mxu0 }
 0x760   : > { %v3590_v7 = vpop.f32.mrb[15].mxu0  ;;  %v1451_v8 = vadd.f32 %v1446_v4, %v4279_v39  ;;  %v3779_v39 = vld [vmem:[#allocation4 + $0x30] ss:$8 sps:$4 sm:$0xff]  }
 0x761   : > { %1595 = vmatpush1.bf16.msra.mxu1 %v3779_v39 }
 0x762   : > { %1454 = vadd.xlane.f32.xlu1 %v1451_v8  ;;  %1596 = vmatprep.subr.bf16.mxu1 %v3784_v20 }
 0x765   : > { %1597 = vmatpush1.bf16.msra.mxu1 %v3782_v21 }
 0x766   : > { %1598 = vmatprep.subr.bf16.mxu1 %v3787_v22 }
 0x769   : > { %1599 = vmatpush1.bf16.msra.mxu1 %v3785_v23 }
 0x76a   : > { %1600 = vmatprep.subr.bf16.mxu1 %v3790_v24 }
 0x76d   : > { %1601 = vmatpush1.bf16.msra.mxu1 %v3788_v26 }
 0x76e   : > { %1602 = vmatprep.subr.bf16.mxu1 %v3793_v27 }
 0x771   : > { %1603 = vmatpush1.bf16.msra.mxu1 %v3791_v28  ;;  %v3268_v28 = vld [vmem:[%s4620_s13] ss:$0 sm:$0xff] }
 0x7ef   : > { %v1455_v16 = vpop.xlane.xlu1 %1454 }
 0x7f0   : > { %v1456_v17 = vmul.f32 0.0078125, %v1455_v16 }
 0x7f2   : > { %v1457_v18 = vsub.f32 %v1451_v8, %v1456_v17 }
 0x7f4   : > { %v1458_v58 = vmul.f32 %v1457_v18, %v1457_v18 }
 0x7f6   : > { %1459 = vadd.xlane.f32.xlu0 %v1458_v58 }
 0x883   : > { %v1460_v29 = vpop.xlane.xlu0 %1459 }
 0x884   : > { %v1461_v30 = vmul.f32 0.0078125, %v1460_v29 }
 0x886   : > { %v1462_v31 = vadd.f32 1e-12, %v1461_v30 }
 0x888   : > { %3908 = vrsqrt.f32 %v1462_v31 }
 0x892   : > { %v3909_v32 = vpop.eup %3908 }
 0x893   : > { %v1464_v34 = vmul.f32 %v3909_v32, %v1457_v18 }
 0x895   : > { %v1471_v36 = vmul.f32 %v3250_v33, %v1464_v34 }
 0x897   : > { %v4421_v37 = vadd.f32 %v3251_v35, %v1471_v36  ;;  %v3810_v35 = vld [vmem:[#allocation2 + $0xc0] ss:$12 sps:$4 sm:$0xff]   ;;  %v3812_v36 = vld [vmem:[#allocation2 + $0xc4] ss:$12 sps:$4 sm:$0xff]  }
 0x898   : > { %2032 = vmatprep.subr.bf16.mxu1 %v3812_v36 }
 0x899   : > { %v1479_v38 = vpack.c.bf16 %v4421_v37, %v4421_v37 }
 0x89b   : > { %1621 = vmatmul.mubr.bf16.vlgmr.msra.gmra.mrb[28].mxu1 %v1479_v38  ;;  %v3813_v38 = vld [vmem:[#allocation2 + $0xc8] ss:$12 sps:$4 sm:$0xff]  }
 0x89c   : > { %2064 = vmatprep.mubr.bf16.mxu1 %v4050_v25  ;;  %2033 = vmatpush1.bf16.msra.mxu1 %v3810_v35 }
 0x89d   : > { %2034 = vmatprep.subr.bf16.mxu1 %v3816_v40 }
 0x8a0   : > { %2035 = vmatpush1.bf16.msra.mxu1 %v3814_v44 }
 0x8a1   : > { %2036 = vmatprep.subr.bf16.mxu1 %v3820_v47 }
 0x8a4   : > { %2037 = vmatpush1.bf16.msra.mxu1 %v3818_v48 }
 0x8a5   : > { %2038 = vmatprep.subr.bf16.mxu1 %v3824_v53 }
 0x8a8   : > { %2039 = vmatpush1.bf16.msra.mxu1 %v3822_v54 }
 0x8a9   : > { %2040 = vmatprep.subr.bf16.mxu1 %v3828_v56 }
 0x8ac   : > { %2041 = vmatpush1.bf16.msra.mxu1 %v3826_v57 }
 0x8ad   : > { %2042 = vmatprep.subr.bf16.mxu1 %v3832_v60 }
 0x8b0   : > { %2043 = vmatpush1.bf16.msra.mxu1 %v3830_v61 }
 0x96e   : > { %v1622_v0 = vpop.f32.mrb[28].mxu1 }
 0x96f   : > { %v1623_v1 = vadd.f32 %v1622_v0, %v1501_v62  ;;  %v1624_v2 = vpop.f32.mrb[29].mxu1  ;;  %v3833_v62 = vld [vmem:[#allocation2 + $0x140] ss:$12 sps:$4 sm:$0xff]   ;;  %v3834_v0 = vld [vmem:[#allocation2 + $0x150] ss:$12 sps:$4 sm:$0xff]  }
 0x970   : > { %v1625_v4 = vadd.f32 %v1624_v2, %v1505_v63  ;;  %v1626_v5 = vpop.f32.mrb[30].mxu1  ;;  %v3836_v63 = vld [vmem:[#allocation2 + $0x154] ss:$12 sps:$4 sm:$0xff]   ;;  %v3840_v2 = vld [vmem:[#allocation2 + $0x16c] ss:$12 sps:$4 sm:$0xff]  }
 0x971   : > { %v1629_v6 = vmul.f32 %v1623_v1, %v1623_v1  ;;  %v1627_v7 = vpop.f32.mrb[31].mxu1  ;;  %2044 = vmatprep.subr.bf16.mxu1 %v3836_v63  ;;  %v3841_v5 = vld [vmem:[#allocation2 + $0x170] ss:$12 sps:$4 sm:$0xff]  }
 0x972   : > { %v1630_v8 = vmul.f32 %v1625_v4, %v1625_v4  ;;  %2045 = vmatpush1.bf16.msra.mxu1 %v3834_v0 }
 0x973   : > { %v1631_v9 = vmul.f32 %v1629_v6, %v1623_v1  ;;  %2046 = vmatprep.subr.bf16.mxu1 %v3840_v2 }
 0x974   : > { %v1632_v10 = vmul.f32 %v1630_v8, %v1625_v4 }
 0x975   : > { %v1633_v11 = vmul.f32 0.044715, %v1631_v9 }
 0x976   : > { %v1634_v13 = vmul.f32 0.044715, %v1632_v10  ;;  %v3285_v10 = vld [vmem:[%s4643_s22] ss:$0 sm:$0xff] }
 0x977   : > { %v1635_v14 = vadd.f32 %v1633_v11, %v1623_v1 }
 0x978   : > { %v1636_v15 = vadd.f32 %v1634_v13, %v1625_v4  ;;  %v3286_v13 = vld [vmem:[%s4644_s18] ss:$0 sm:$0xff] }
 0x979   : > { %v1637_v16 = vmul.f32 0.7978846, %v1635_v14 }
 0x97a   : > { %v1638_v17 = vmul.f32 0.7978846, %v1636_v15 }
 0x97b   : > { %3910 = vtanh.f32 %v1637_v16 }
 0x97c   : > { %3912 = vtanh.f32 %v1638_v17  ;;  %v3287_v17 = vld [vmem:[%s4612_s5 + $0x3] sm:$0x7] }
 0x985   : > { %v3911_v18 = vpop.eup %3910 }
 0x986   : > { %v3913_v58 = vpop.eup %3912  ;;  %v1641_v19 = vadd.f32 1.0, %v3911_v18  ;;  %v1892_v18 = vrot.slane %v3287_v17, %v4297_v46 }
 0x987   : > { %v1642_v39 = vadd.f32 1.0, %v3913_v58  ;;  %v1900_v58 = vrot.slane %v3287_v17, %v651_v43 }
 0x988   : > { %v1643_v20 = vmul.f32 0.5, %v1641_v19  ;;  %v1896_v19 = vrot.slane %v3287_v17, %v4294_v45 }
 0x989   : > { %v1644_v21 = vmul.f32 0.5, %v1642_v39 }
 0x98a   : > { %v1645_v22 = vmul.f32 %v1643_v20, %v1623_v1  ;;  %v3837_v1 = vld [vmem:[#allocation2 + $0x158] ss:$12 sps:$4 sm:$0xff]  }
 0x98b   : > { %v1646_v23 = vmul.f32 %v1644_v21, %v1625_v4  ;;  %v3838_v4 = vld [vmem:[#allocation2 + $0x168] ss:$12 sps:$4 sm:$0xff]  }
 0x98c   : > { %v1647_v26 = vpack.c.bf16 %v1645_v22, %v1645_v22  ;;  %2047 = vmatpush1.bf16.msra.mxu1 %v3838_v4 }
 0x98d   : > { %v1648_v24 = vpack.c.bf16 %v1646_v23, %v1646_v23  ;;  %3611 = vmatprep.subr.bf16.mxu1 %v4049_v3 }
 0x98f   : > { %1816 = vmatprep.mubr.bf16.mxu0 %v1648_v24 }
 0x990   : > { %1817 = vmatmul.mubr.bf16.vlgmr.msra.gmra.mrb[16].mxu0 %v1647_v26 }
 0x991   : > { %3607 = vmatprep.mubr.msk.bf16.mxu0 %vm4051_vm0, %v4049_v3  ;;  %3592 = vmatpush3.bf16.msra.mxu0 %v3813_v38 }
 0x992   : > { %3593 = vmatprep.subr.bf16.mxu0 %v4049_v3 }
 0x995   : > { %3594 = vmatpush3.bf16.msra.mxu0 %v3817_v41 }
 0x996   : > { %3595 = vmatprep.subr.bf16.mxu0 %v4049_v3 }
 0x999   : > { %3596 = vmatpush3.bf16.msra.mxu0 %v3821_v52 }
 0x99a   : > { %3597 = vmatprep.subr.bf16.mxu0 %v4049_v3 }
 0x99d   : > { %3598 = vmatpush3.bf16.msra.mxu0 %v3825_v55 }
 0x99e   : > { %3599 = vmatprep.subr.bf16.mxu0 %v4049_v3 }
 0x9a1   : > { %3600 = vmatpush3.bf16.msra.mxu0 %v3829_v59 }
 0x9a2   : > { %3601 = vmatprep.subr.bf16.mxu0 %v4049_v3 }
 0x9a5   : > { %3602 = vmatpush3.bf16.msra.mxu0 %v3833_v62 }
 0x9a6   : > { %3603 = vmatprep.subr.bf16.mxu0 %v4049_v3 }
 0x9a9   : > { %3604 = vmatpush3.bf16.msra.mxu0 %v3837_v1 }
 0x9aa   : > { %3605 = vmatprep.subr.bf16.mxu0 %v4049_v3 }
 0x9ad   : > { %3606 = vmatpush3.bf16.msra.mxu0 %v3841_v5 }
 0x9ae   : > { %3635 = vmatprep.subr.bf16.mxu0 %v4049_v3 }
 0xa63   : > { %v3441_v27 = vpop.f32.mrb[16].mxu0 }
 0xa64   : > { %v3442_v29 = vpop.f32.mrb[17].mxu0 }
 0xa65   : > { %v3443_v30 = vadd.f32 %v3442_v29, %v3441_v27  ;;  %v3444_v31 = vpop.f32.mrb[18].mxu0 }
 0xa66   : > { %v3445_v32 = vpop.f32.mrb[19].mxu0 }
 0xa67   : > { %v1819_v33 = vadd.f32 %v3443_v30, %v3268_v28 }
 0xa69   : > { %v1824_v34 = vadd.f32 %v1819_v33, %v4421_v37 }
 0xa6b   : > { %1827 = vadd.xlane.f32.xlu0 %v1824_v34 }
 0xaf8   : > { %v1828_v37 = vpop.xlane.xlu0 %1827 }
 0xaf9   : > { %v1829_v49 = vmul.f32 0.0078125, %v1828_v37 }
 0xafb   : > { %v1830_v50 = vsub.f32 %v1824_v34, %v1829_v49 }
 0xafd   : > { %v1831_v51 = vmul.f32 %v1830_v50, %v1830_v50 }
 0xaff   : > { %1832 = vadd.xlane.f32.xlu1 %v1831_v51 }
 0xb8c   : > { %v1833_v6 = vpop.xlane.xlu1 %1832 }
 0xb8d   : > { %v1834_v7 = vmul.f32 0.0078125, %v1833_v6 }
 0xb8f   : > { %v1835_v8 = vadd.f32 1e-12, %v1834_v7 }
 0xb91   : > { %3914 = vrsqrt.f32 %v1835_v8 }
 0xb9b   : > { %v3915_v9 = vpop.eup %3914 }
 0xb9c   : > { %v1837_v11 = vmul.f32 %v3915_v9, %v1830_v50 }
 0xb9e   : > { %v1844_v14 = vmul.f32 %v3285_v10, %v1837_v11 }
 0xba0   : > { %v4453_v15 = vadd.f32 %v3286_v13, %v1844_v14 }
 0xba2   : > { %v1852_v16 = vpack.c.bf16 %v4453_v15, %v4453_v15 }
 0xba4   : > { %2065 = vmatmul.mubr.bf16.vlgmr.msra.gmra.mrb[32].mxu1 %v1852_v16  ;;  %3608 = vmatmul.mubr.bf16.vlgmr.msra.gmra.mrb[20].mxu0 %v1852_v16 }
 0xba5   : > { %3613 = vmatprep.mubr.msk.bf16.mxu1 %vm4051_vm0, %v4049_v3  ;;  %3637 = vmatprep.mubr.msk.bf16.mxu0 %vm4051_vm0, %v4049_v3 }
 0xc77   : > { %v2066_v39 = vpop.f32.mrb[32].mxu1  ;;  %v2107_v20 = vpop.f32.mrb[20].mxu0 }
 0xc78   : > { %v2067_v21 = vadd.f32 %v2066_v39, %v1892_v18  ;;  %v2108_v22 = vadd.f32 %v2107_v20, %v1900_v58  ;;  %v2068_v23 = vpop.f32.mrb[33].mxu1  ;;  %v3609_v24 = vpop.f32.mrb[21].mxu0 }
 0xc79   : > { %v2069_v26 = vadd.f32 %v2068_v23, %v1896_v19  ;;  %v2070_v27 = vpop.f32.mrb[34].mxu1  ;;  %v2110_v28 = vpop.f32.mrb[22].mxu0 }
 0xc7a   : > { %v2113_v29 = vpack.c.bf16 %v2067_v21, %v2067_v21  ;;  %v4468_v30 = vpack.c.bf16 %v2108_v22, %v2108_v22  ;;  %v2071_v31 = vpop.f32.mrb[35].mxu1  ;;  %v3610_v32 = vpop.f32.mrb[23].mxu0 }
 0xc7b   : > { %v2114_v33 = vpack.c.bf16 %v2069_v26, %v2069_v26 }
 0xc7c   : > { %2162 = vrot.lane.b32.xlu1 %v2113_v29, %s4053_s23  ;;  %v2371_v42 = vsel %vm1130_vm1, %v4468_v30, 0 }
 0xc7d   : > { %3636 = vmatpush3.bf16.msra.mxu0 %v2371_v42  ;;  %2165 = vrot.lane.b32.xlu0 %v2114_v33, %s4053_s23  ;;  %v2119_v43 = vsel %vm867_vm2, %v2114_v33, 0 }
 0xc7e   : > { %3612 = vmatpush3.bf16.xpose.msra.mxu1 %v2119_v43  ;;  %3647 = vmatprep.subr.bf16.mxu0 %v4049_v3 }
 0xc7f   : > { %3617 = vmatprep.subr.bf16.mxu1 %v4049_v3 }
 0xc80   : > { %2215 = vrot.lane.b32.xlu1 %v2114_v33, %s4052_s0 }
 0xc81   : > { %2213 = vrot.lane.b32.xlu0 %v2113_v29, %s4052_s0 }
 0xc84   : > { %2265 = vrot.lane.b32.xlu1 %v2114_v33, %s4054_s27 }
 0xc85   : > { %2263 = vrot.lane.b32.xlu0 %v2113_v29, %s4054_s27  ;;  %3614 = vmatmul.mubr.msk.bf16.vlgmr.msra.gmra.mrb[36].mxu1 %vm867_vm2, %v2113_v29 }
 0xc86   : > { %3619 = vmatprep.mubr.msk.bf16.mxu1 %vm4051_vm0, %v4049_v3 }
 0xcee   : > { %v2163_v34 = vpop.permute.xlu1 %2162 }
 0xcef   : > { %v2166_v35 = vpop.permute.xlu0 %2165 }
 0xcf0   : > { %v2171_v36 = vsel %vm867_vm2, %v2166_v35, 0 }
 0xcf1   : > { %3618 = vmatpush3.bf16.xpose.msra.mxu1 %v2171_v36 }
 0xcf2   : > { %3623 = vmatprep.subr.bf16.mxu1 %v4049_v3  ;;  %v2216_v38 = vpop.permute.xlu1 %2215 }
 0xcf3   : > { %v2221_v40 = vsel %vm867_vm2, %v2216_v38, 0  ;;  %v2214_v44 = vpop.permute.xlu0 %2213 }
 0xcf6   : > { %v2266_v41 = vpop.permute.xlu1 %2265 }
 0xcf7   : > { %v2271_v47 = vsel %vm867_vm2, %v2266_v41, 0  ;;  %v2264_v48 = vpop.permute.xlu0 %2263 }
 0xcf8   : > { %3620 = vmatmul.mubr.msk.bf16.vlgmr.msra.gmra.mrb[40].mxu1 %vm867_vm2, %v2163_v34 }
 0xcf9   : > { %3624 = vmatpush3.bf16.xpose.msra.mxu1 %v2221_v40  ;;  %3625 = vmatprep.mubr.msk.bf16.mxu1 %vm4051_vm0, %v4049_v3 }
 0xcfa   : > { %3629 = vmatprep.subr.bf16.mxu1 %v4049_v3 }
 0xd00   : > { %3626 = vmatmul.mubr.msk.bf16.vlgmr.msra.gmra.mrb[44].mxu1 %vm867_vm2, %v2214_v44 }
 0xd01   : > { %3630 = vmatpush3.bf16.xpose.msra.mxu1 %v2271_v47  ;;  %3631 = vmatprep.mubr.msk.bf16.mxu1 %vm4051_vm0, %v4049_v3 }
 0xd02   : > { %3641 = vmatprep.subr.bf16.mxu1 %v4049_v3 }
 0xd08   : > { %3632 = vmatmul.mubr.msk.bf16.vlgmr.msra.gmra.mrb[48].mxu1 %vm867_vm2, %v2264_v48 }
 0xd09   : > { %3643 = vmatprep.mubr.msk.bf16.mxu1 %vm4051_vm0, %v4049_v3 }
 0xd58   : > { %v2155_v37 = vpop.f32.mrb[36].mxu1 }
 0xd59   : > { %v2313_v49 = vmul.f32 0.17677669, %v2155_v37  ;;  %v3615_v50 = vpop.f32.mrb[37].mxu1 }
 0xd5a   : > { %v2158_v51 = vpop.f32.mrb[38].mxu1 }
 0xd5b   : > { %v3616_v52 = vpop.f32.mrb[39].mxu1  ;;  %v2317_v53 = vadd.f32 %v4338_v12, %v2313_v49 }
 0xd5d   : > { %v2321_v54 = vsel %vm1080_vm3, %v2317_v53, -inf }
 0xd5e   : > { %2322 = vmax.xlane.f32.xlu1 %v2321_v54 }
 0xdcb   : > { %v2207_v55 = vpop.f32.mrb[40].mxu1 }
 0xdcc   : > { %v2314_v56 = vmul.f32 0.17677669, %v2207_v55  ;;  %v3621_v57 = vpop.f32.mrb[41].mxu1 }
 0xdcd   : > { %v2210_v59 = vpop.f32.mrb[42].mxu1 }
 0xdce   : > { %v3622_v60 = vpop.f32.mrb[43].mxu1  ;;  %v2318_v61 = vadd.f32 %v4338_v12, %v2314_v56 }
 0xdd0   : > { %v2324_v62 = vsel %vm1080_vm3, %v2318_v61, -inf }
 0xdd1   : > { %2325 = vmax.xlane.f32.xlu0 %v2324_v62 }
 0xdd3   : > { %v2257_v63 = vpop.f32.mrb[44].mxu1 }
 0xdd4   : > { %v2315_v0 = vmul.f32 0.17677669, %v2257_v63  ;;  %v3627_v1 = vpop.f32.mrb[45].mxu1 }
 0xdd5   : > { %v2260_v2 = vpop.f32.mrb[46].mxu1  ;;  %v3843_v1 = vld [vmem:[%s4613_s6 + $0x48] sm:$0xff]  }
 0xdd6   : > { %v3628_v4 = vpop.f32.mrb[47].mxu1  ;;  %v2319_v5 = vadd.f32 %v4338_v12, %v2315_v0  ;;  %v3842_v0 = vld [vmem:[%s4613_s6 + $0x40] sm:$0xff]  }
 0xdd8   : > { %v2327_v6 = vsel %vm1080_vm3, %v2319_v5, -inf }
 0xdd9   : > { %2328 = vmax.xlane.f32.xlu0 %v2327_v6 }
 0xddb   : > { %v2307_v7 = vpop.f32.mrb[48].mxu1 }
 0xddc   : > { %v2316_v8 = vmul.f32 0.17677669, %v2307_v7  ;;  %v3633_v9 = vpop.f32.mrb[49].mxu1  ;;  %v3845_v7 = vld [vmem:[%s4613_s6 + $0x58] sm:$0xff]  }
 0xddd   : > { %v2310_v10 = vpop.f32.mrb[50].mxu1 }
 0xdde   : > { %v3634_v11 = vpop.f32.mrb[51].mxu1  ;;  %v2320_v13 = vadd.f32 %v4338_v12, %v2316_v8 }
 0xddf   : > { %v3846_v11 = vld [vmem:[%s4613_s6 + $0x60] sm:$0xff]  }
 0xde0   : > { %v2330_v14 = vsel %vm1080_vm3, %v2320_v13, -inf }
 0xde1   : > { %2331 = vmax.xlane.f32.xlu1 %v2330_v14  ;;  %v3847_v14 = vld [vmem:[%s4613_s6 + $0x68] sm:$0xff]  }
 0xdeb   : > { %v2323_v16 = vpop.xlane.xlu1 %2322 }
 0xdec   : > { %v2333_v17 = vsub.f32 %v2317_v53, %v2323_v16  ;;  %v3848_v16 = vld [vmem:[%s4613_s6 + $0x70] sm:$0xff]  }
 0xdee   : > { %v2337_v18 = vmul.f32 1.442695, %v2333_v17  ;;  %v3849_v17 = vld [vmem:[%s4613_s6 + $0x78] sm:$0xff]  }
 0xdf0   : > { %3916 = vpow2.f32 %v2337_v18 }
 0xdfa   : > { %v3917_v58 = vpop.eup %3916 }
 0xdfb   : > { %v2345_v19 = vsel %vm1080_vm3, %v3917_v58, 0.0 }
 0xdfc   : > { %2346 = vadd.xlane.f32.xlu0 %v2345_v19 }
 0xe5e   : > { %v2326_v39 = vpop.xlane.xlu0 %2325 }
 0xe5f   : > { %v2334_v20 = vsub.f32 %v2318_v61, %v2326_v39 }
 0xe61   : > { %v2339_v21 = vmul.f32 1.442695, %v2334_v20 }
 0xe63   : > { %3918 = vpow2.f32 %v2339_v21 }
 0xe66   : > { %v2329_v22 = vpop.xlane.xlu0 %2328 }
 0xe67   : > { %v2335_v23 = vsub.f32 %v2319_v5, %v2329_v22 }
 0xe69   : > { %v2341_v24 = vmul.f32 1.442695, %v2335_v23 }
 0xe6b   : > { %3920 = vpow2.f32 %v2341_v24 }
 0xe6d   : > { %v3919_v12 = vpop.eup %3918 }
 0xe6e   : > { %v2348_v26 = vsel %vm1080_vm3, %v3919_v12, 0.0  ;;  %v2332_v31 = vpop.xlane.xlu1 %2331 }
 0xe6f   : > { %2349 = vadd.xlane.f32.xlu1 %v2348_v26  ;;  %v2336_v32 = vsub.f32 %v2320_v13, %v2332_v31  ;;  %v3337_v26 = vld [vmem:[%s4614_s7 + $0x1] ss:$0 sm:$0xff] }
 0xe71   : > { %v2343_v33 = vmul.f32 1.442695, %v2336_v32 }
 0xe75   : > { %v3921_v27 = vpop.eup %3920 }
 0xe76   : > { %v2351_v28 = vsel %vm1080_vm3, %v3921_v27, 0.0 }
 0xe77   : > { %2352 = vadd.xlane.f32.xlu0 %v2351_v28 }
 0xe80   : > { %2464 = vrot.lane.b32.xlu1 %v4468_v30, %s4052_s0 }
 0xe89   : > { %v2347_v29 = vpop.xlane.xlu0 %2346 }
 0xe8a   : > { %3922 = vrcp.f32 %v2347_v29 }
 0xe8b   : > { %3924 = vpow2.f32 %v2343_v33 }
 0xe8d   : > { %2415 = vrot.lane.b32.xlu0 %v4468_v30, %s4053_s23 }
 0xe94   : > { %v3923_v42 = vpop.eup %3922 }
 0xe95   : > { %v2361_v43 = vmul.f32 %v3923_v42, %v3917_v58  ;;  %v3925_v35 = vpop.eup %3924  ;;  %v3850_v42 = vld [vmem:[#allocation4 + $0x80] ss:$8 sps:$4 sm:$0xff]  }
 0xe96   : > { %v2354_v36 = vsel %vm1080_vm3, %v3925_v35, 0.0 }
 0xe97   : > { %v2365_v34 = vpack.c.bf16 %v2361_v43, %v2361_v43  ;;  %v3852_v43 = vld [vmem:[#allocation4 + $0x84] ss:$8 sps:$4 sm:$0xff]  }
 0xe99   : > { %3638 = vmatmul.mubr.msk.bf16.vlgmr.msra.gmra.mrb[24].mxu0 %vm1080_vm3, %v2365_v34  ;;  %v3855_v34 = vld [vmem:[#allocation4 + $0x94] ss:$8 sps:$4 sm:$0xff]  }
 0xe9a   : > { %3649 = vmatprep.mubr.msk.bf16.mxu0 %vm4051_vm0, %v4049_v3 }
 0xea4   : > { %2355 = vadd.xlane.f32.xlu1 %v2354_v36  ;;  %v3858_v36 = vld [vmem:[#allocation4 + $0xa4] ss:$8 sps:$4 sm:$0xff]  }
 0xeb5   : > { %2513 = vrot.lane.b32.xlu1 %v4468_v30, %s4054_s27 }
 0xefc   : > { %v2350_v38 = vpop.xlane.xlu1 %2349 }
 0xefd   : > { %3926 = vrcp.f32 %v2350_v38  ;;  %v3856_v38 = vld [vmem:[#allocation4 + $0xa0] ss:$8 sps:$4 sm:$0xff]  }
 0xf00   : > { %v2465_v40 = vpop.permute.xlu1 %2464 }
 0xf01   : > { %v2470_v41 = vsel %vm1130_vm1, %v2465_v40, 0 }
 0xf02   : > { %3648 = vmatpush3.bf16.msra.mxu0 %v2470_v41 }
 0xf03   : > { %3659 = vmatprep.subr.bf16.mxu0 %v4049_v3 }
 0xf04   : > { %v2353_v44 = vpop.xlane.xlu0 %2352 }
 0xf05   : > { %3928 = vrcp.f32 %v2353_v44 }
 0xf07   : > { %v3927_v47 = vpop.eup %3926 }
 0xf08   : > { %v2362_v48 = vmul.f32 %v3927_v47, %v3919_v12  ;;  %v2416_v37 = vpop.permute.xlu0 %2415 }
 0xf09   : > { %v2421_v49 = vsel %vm1130_vm1, %v2416_v37, 0  ;;  %v3864_v37 = vld [vmem:[#allocation4 + $0xc4] ss:$8 sps:$4 sm:$0xff]  }
 0xf0a   : > { %3642 = vmatpush3.bf16.msra.mxu1 %v2421_v49  ;;  %v2413_v50 = vpack.c.bf16 %v2362_v48, %v2362_v48  ;;  %v3861_v48 = vld [vmem:[#allocation4 + $0xb4] ss:$8 sps:$4 sm:$0xff]   ;;  %v3862_v49 = vld [vmem:[#allocation4 + $0xc0] ss:$8 sps:$4 sm:$0xff]  }
 0xf0b   : > { %3653 = vmatprep.subr.bf16.mxu1 %v4049_v3 }
 0xf0d   : > { %3644 = vmatmul.mubr.msk.bf16.vlgmr.msra.gmra.mrb[52].mxu1 %vm1080_vm3, %v2413_v50  ;;  %v3867_v50 = vld [vmem:[#allocation4 + $0xd4] ss:$8 sps:$4 sm:$0xff]  }
 0xf0e   : > { %3655 = vmatprep.mubr.msk.bf16.mxu1 %vm4051_vm0, %v4049_v3 }
 0xf0f   : > { %v3929_v30 = vpop.eup %3928 }
 0xf10   : > { %v2363_v51 = vmul.f32 %v3929_v30, %v3921_v27  ;;  %v3865_v30 = vld [vmem:[#allocation4 + $0xd0] ss:$8 sps:$4 sm:$0xff]  }
 0xf12   : > { %v2463_v52 = vpack.c.bf16 %v2363_v51, %v2363_v51  ;;  %v3870_v51 = vld [vmem:[#allocation4 + $0xe4] ss:$8 sps:$4 sm:$0xff]  }
 0xf14   : > { %3650 = vmatmul.mubr.msk.bf16.vlgmr.msra.gmra.mrb[28].mxu0 %vm1080_vm3, %v2463_v52  ;;  %v3868_v52 = vld [vmem:[#allocation4 + $0xe0] ss:$8 sps:$4 sm:$0xff]  }
 0xf15   : > { %3675 = vmatprep.mubr.msk.bf16.mxu0 %vm4051_vm0, %v4049_v3  ;;  %3660 = vmatpush3.bf16.msra.mxu0 %v3842_v0 }
 0xf16   : > { %3661 = vmatprep.subr.bf16.mxu0 %v4049_v3 }
 0xf19   : > { %3662 = vmatpush3.bf16.msra.mxu0 %v3843_v1 }
 0xf1a   : > { %3663 = vmatprep.subr.bf16.mxu0 %v4049_v3 }
 0xf31   : > { %v2356_v53 = vpop.xlane.xlu1 %2355 }
 0xf32   : > { %3930 = vrcp.f32 %v2356_v53  ;;  %v3873_v53 = vld [vmem:[#allocation4 + $0xf4] ss:$8 sps:$4 sm:$0xff]  }
 0xf35   : > { %v2514_v54 = vpop.permute.xlu1 %2513 }
 0xf36   : > { %v2519_v55 = vsel %vm1130_vm1, %v2514_v54, 0  ;;  %v3871_v54 = vld [vmem:[#allocation4 + $0xf0] ss:$8 sps:$4 sm:$0xff]  }
 0xf37   : > { %3654 = vmatpush3.bf16.msra.mxu1 %v2519_v55 }
 0xf38   : > { %2831 = vmatprep.subr.bf16.mxu1 %v3852_v43 }
 0xf3c   : > { %v3931_v56 = vpop.eup %3930 }
 0xf3d   : > { %v2364_v57 = vmul.f32 %v3931_v56, %v3925_v35  ;;  %v3853_v35 = vld [vmem:[#allocation4 + $0x90] ss:$8 sps:$4 sm:$0xff]  }
 0xf3f   : > { %v2512_v59 = vpack.c.bf16 %v2364_v57, %v2364_v57 }
 0xf41   : > { %3656 = vmatmul.mubr.msk.bf16.vlgmr.msra.gmra.mrb[56].mxu1 %vm1080_vm3, %v2512_v59 }
 0xf42   : > { %2863 = vmatprep.mubr.bf16.mxu1 %v4050_v25  ;;  %v3844_v25 = vld [vmem:[%s4613_s6 + $0x50] sm:$0xff]   ;;  %2832 = vmatpush1.bf16.msra.mxu1 %v3850_v42 }
 0xf43   : > { %3664 = vmatpush3.bf16.msra.mxu0 %v3844_v25  ;;  %2833 = vmatprep.subr.bf16.mxu1 %v3855_v34  ;;  %v3876_v25 = vld [vmem:[#allocation6 + $0xc8] sm:$0xff]  }
 0xf44   : > { %3665 = vmatprep.subr.bf16.mxu0 %v4049_v3 }
 0xf46   : > { %2834 = vmatpush1.bf16.msra.mxu1 %v3853_v35 }
 0xf47   : > { %3666 = vmatpush3.bf16.msra.mxu0 %v3845_v7  ;;  %2835 = vmatprep.subr.bf16.mxu1 %v3858_v36  ;;  %v3879_v7 = vld [vmem:[#allocation6 + $0x90] sm:$0xff]  }
 0xf48   : > { %3667 = vmatprep.subr.bf16.mxu0 %v4049_v3 }
 0xf4a   : > { %2836 = vmatpush1.bf16.msra.mxu1 %v3856_v38 }
 0xf4b   : > { %3668 = vmatpush3.bf16.msra.mxu0 %v3846_v11  ;;  %2837 = vmatprep.subr.bf16.mxu1 %v3861_v48  ;;  %v3883_v11 = vld [vmem:[#allocation6 + $0xa0] sm:$0xff]  }
 0xf4c   : > { %3669 = vmatprep.subr.bf16.mxu0 %v4049_v3 }
 0xf4f   : > { %3670 = vmatpush3.bf16.msra.mxu0 %v3847_v14  ;;  %v3885_v14 = vld [vmem:[#allocation6 + $0xa8] sm:$0xff]  }
 0xf50   : > { %3671 = vmatprep.subr.bf16.mxu0 %v4049_v3 }
 0xf53   : > { %3672 = vmatpush3.bf16.msra.mxu0 %v3848_v16  ;;  %v3886_v16 = vld [vmem:[#allocation6 + $0xf0] sm:$0xff]  }
 0xf54   : > { %3673 = vmatprep.subr.bf16.mxu0 %v4049_v3 }
 0xf57   : > { %3674 = vmatpush3.bf16.msra.mxu0 %v3849_v17  ;;  %v3887_v17 = vld [vmem:[#allocation6 + $0xb0] sm:$0xff]  }
 0xf6c   : > { %v2407_v60 = vpop.f32.mrb[24].mxu0 }
 0xf6d   : > { %v3639_v61 = vpop.f32.mrb[25].mxu0 }
 0xf6e   : > { %v2410_v62 = vpop.f32.mrb[26].mxu0 }
 0xf6f   : > { %v3640_v63 = vpop.f32.mrb[27].mxu0  ;;  %v3349_v62 = vld [vmem:[%s4616_s9 + $0x1] ss:$0 sm:$0xff] }
 0xfe0   : > { %v2457_v2 = vpop.f32.mrb[52].mxu1 }
 0xfe1   : > { %2562 = vrot.lane.b32.xlu0 %v2457_v2, %s4054_s27  ;;  %v3645_v4 = vpop.f32.mrb[53].mxu1  ;;  %v3874_v2 = vld [vmem:[#allocation6 + $0xc0] sm:$0xff]  }
 0xfe2   : > { %v2460_v5 = vpop.f32.mrb[54].mxu1  ;;  %v3875_v4 = vld [vmem:[#allocation6 + $0x80] sm:$0xff]   ;;  %3481 = vmatprep.subr.bf16.mxu0 %v3874_v2 }
 0xfe3   : > { %v3646_v6 = vpop.f32.mrb[55].mxu1  ;;  %v3877_v5 = vld [vmem:[#allocation6 + $0x88] sm:$0xff]  }
 0xfe4   : > { %v3878_v6 = vld [vmem:[#allocation6 + $0xd0] sm:$0xff]  }
 0xfe7   : > { %v2506_v8 = vpop.f32.mrb[28].mxu0 }
 0xfe8   : > { %2566 = vrot.lane.b32.xlu1 %v2506_v8, %s4052_s0  ;;  %v3651_v9 = vpop.f32.mrb[29].mxu0  ;;  %v3880_v8 = vld [vmem:[#allocation6 + $0xd8] sm:$0xff]  }
 0xfe9   : > { %v2509_v10 = vpop.f32.mrb[30].mxu0  ;;  %v3881_v9 = vld [vmem:[#allocation6 + $0x98] sm:$0xff]  }
 0xfea   : > { %v3652_v13 = vpop.f32.mrb[31].mxu0  ;;  %v3882_v10 = vld [vmem:[#allocation6 + $0xe0] sm:$0xff]  }
 0xfeb   : > { %v3884_v13 = vld [vmem:[#allocation6 + $0xe8] sm:$0xff]  }
0x1014   : > { %v2555_v18 = vpop.f32.mrb[56].mxu1 }
0x1015   : > { %2570 = vrot.lane.b32.xlu0 %v2555_v18, %s4053_s23  ;;  %v3657_v58 = vpop.f32.mrb[57].mxu1  ;;  %v3888_v18 = vld [vmem:[#allocation6 + $0xf8] sm:$0xff]   ;;  %s4645_s23 = sld [smem:[#allocation13_spill]] }
0x1016   : > { %v2558_v19 = vpop.f32.mrb[58].mxu1  ;;  %v3889_v58 = vld [vmem:[#allocation6 + $0xb8] sm:$0xff]  }
0x1017   : > { %v3658_v39 = vpop.f32.mrb[59].mxu1  ;;  %v3350_v19 = vld [vmem:[%s4618_s11 + $0x2] sm:$0x3] }
0x1018   : > { %v2744_v39 = vrot.slane %v3350_v19, %v4297_v46 }
0x101b   : > { %s574_s28 = scalar_lea.vmem %s4645_s23, %s3204_s25 }
0x1053   : > { %v2563_v20 = vpop.permute.xlu0 %2562 }
0x1054   : > { %v2573_v22 = vsel %vm867_vm2, %v2407_v60, %v2563_v20  ;;  %v3348_v60 = vld [vmem:[%s4615_s8 + $0x1] ss:$0 sm:$0xff]  ;;  %v2748_v20 = vrot.slane %v3350_v19, %v4294_v45 }
0x105a   : > { %v2567_v21 = vpop.permute.xlu1 %2566 }
0x105b   : > { %v2574_v23 = vsel %vm1335_vm4, %v2573_v22, %v2567_v21 }
0x1087   : > { %v2571_v24 = vpop.permute.xlu0 %2570 }
0x1088   : > { %v2575_v3 = vsel %vm1337_vm5, %v2574_v23, %v2571_v24 }
0x1089   : > { %v2576_v12 = vpack.c.bf16 %v2575_v3, %v2575_v3 }
0x108b   : > { %3676 = vmatmul.mubr.bf16.vlgmr.msra.gmra.mrb[32].mxu0 %v2576_v12 }
0x108c   : > { %3482 = vmatpush3.bf16.msra.mxu0 %v3875_v4 }
0x108d   : > { %3483 = vmatprep.subr.bf16.mxu0 %v3876_v25 }
0x1090   : > { %3484 = vmatpush3.bf16.msra.mxu0 %v3877_v5 }
0x1091   : > { %3485 = vmatprep.subr.bf16.mxu0 %v3878_v6 }
0x1094   : > { %3486 = vmatpush3.bf16.msra.mxu0 %v3879_v7 }
0x1095   : > { %3487 = vmatprep.subr.bf16.mxu0 %v3880_v8 }
0x1098   : > { %3488 = vmatpush3.bf16.msra.mxu0 %v3881_v9 }
0x1099   : > { %3489 = vmatprep.subr.bf16.mxu0 %v3882_v10 }
0x109c   : > { %3490 = vmatpush3.bf16.msra.mxu0 %v3883_v11 }
0x109d   : > { %3491 = vmatprep.subr.bf16.mxu0 %v3884_v13 }
0x10a0   : > { %3492 = vmatpush3.bf16.msra.mxu0 %v3885_v14 }
0x10a1   : > { %3493 = vmatprep.subr.bf16.mxu0 %v3886_v16 }
0x10a4   : > { %3494 = vmatpush3.bf16.msra.mxu0 %v3887_v17 }
0x10a5   : > { %3495 = vmatprep.subr.bf16.mxu0 %v3888_v18 }
0x10a8   : > { %3496 = vmatpush3.bf16.msra.mxu0 %v3889_v58 }
0x115e   : > { %v2684_v27 = vpop.f32.mrb[32].mxu0 }
0x115f   : > { %v2685_v28 = vadd.f32 %v3337_v26, %v2684_v27  ;;  %v3677_v29 = vpop.f32.mrb[33].mxu0 }
0x1160   : > { %v2687_v31 = vpop.f32.mrb[34].mxu0 }
0x1161   : > { %v3678_v32 = vpop.f32.mrb[35].mxu0  ;;  %v2690_v33 = vadd.f32 %v2685_v28, %v4453_v15  ;;  %v3859_v15 = vld [vmem:[#allocation4 + $0xb0] ss:$8 sps:$4 sm:$0xff]  }
0x1162   : > { %2838 = vmatpush1.bf16.msra.mxu1 %v3859_v15 }
0x1163   : > { %2695 = vadd.xlane.f32.xlu1 %v2690_v33  ;;  %2839 = vmatprep.subr.bf16.mxu1 %v3864_v37  ;;  %v3368_v37 = vld [vmem:[%s4620_s13 + $0x1] ss:$0 sm:$0xff] }
0x1166   : > { %2840 = vmatpush1.bf16.msra.mxu1 %v3862_v49 }
0x1167   : > { %2841 = vmatprep.subr.bf16.mxu1 %v3867_v50 }
0x116a   : > { %2842 = vmatpush1.bf16.msra.mxu1 %v3865_v30 }
0x116b   : > { %2843 = vmatprep.subr.bf16.mxu1 %v3870_v51 }
0x116e   : > { %2844 = vmatpush1.bf16.msra.mxu1 %v3868_v52 }
0x116f   : > { %2845 = vmatprep.subr.bf16.mxu1 %v3873_v53 }
0x1172   : > { %2846 = vmatpush1.bf16.msra.mxu1 %v3871_v54 }
0x11f0   : > { %v2696_v40 = vpop.xlane.xlu1 %2695 }
0x11f1   : > { %v2697_v41 = vmul.f32 0.0078125, %v2696_v40 }
0x11f3   : > { %v2698_v44 = vsub.f32 %v2690_v33, %v2697_v41 }
0x11f5   : > { %v2699_v47 = vmul.f32 %v2698_v44, %v2698_v44 }
0x11f7   : > { %2700 = vadd.xlane.f32.xlu0 %v2699_v47 }
0x1284   : > { %v2701_v55 = vpop.xlane.xlu0 %2700 }
0x1285   : > { %v2702_v56 = vmul.f32 0.0078125, %v2701_v55 }
0x1287   : > { %v2703_v57 = vadd.f32 1e-12, %v2702_v56 }
0x1289   : > { %3932 = vrsqrt.f32 %v2703_v57 }
0x1293   : > { %v3933_v59 = vpop.eup %3932 }
0x1294   : > { %v2705_v61 = vmul.f32 %v3933_v59, %v2698_v44 }
0x1296   : > { %v2712_v63 = vmul.f32 %v3348_v60, %v2705_v61 }
0x1298   : > { %v4580_v0 = vadd.f32 %v3349_v62, %v2712_v63  ;;  %v3387_v63 = vld [vmem:[%s4643_s22 + $0x1] ss:$0 sm:$0xff] }
0x129a   : > { %v2720_v1 = vpack.c.bf16 %v4580_v0, %v4580_v0 }
0x129c   : > { %2864 = vmatmul.mubr.bf16.vlgmr.msra.gmra.mrb[60].mxu1 %v2720_v1 }
0x136f   : > { %v2865_v21 = vpop.f32.mrb[60].mxu1 }
0x1370   : > { %v2866_v22 = vadd.f32 %v2865_v21, %v2744_v39  ;;  %v2867_v23 = vpop.f32.mrb[61].mxu1 }
0x1371   : > { %v2868_v24 = vadd.f32 %v2867_v23, %v2748_v20  ;;  %v2869_v3 = vpop.f32.mrb[62].mxu1 }
0x1372   : > { %v2872_v12 = vmul.f32 %v2866_v22, %v2866_v22  ;;  %v2870_v26 = vpop.f32.mrb[63].mxu1 }
0x1373   : > { %v2873_v27 = vmul.f32 %v2868_v24, %v2868_v24 }
0x1374   : > { %v2874_v28 = vmul.f32 %v2872_v12, %v2866_v22 }
0x1375   : > { %v2875_v29 = vmul.f32 %v2873_v27, %v2868_v24 }
0x1376   : > { %v2876_v31 = vmul.f32 0.044715, %v2874_v28 }
0x1377   : > { %v2877_v32 = vmul.f32 0.044715, %v2875_v29 }
0x1378   : > { %v2878_v33 = vadd.f32 %v2876_v31, %v2866_v22 }
0x1379   : > { %v2879_v42 = vadd.f32 %v2877_v32, %v2868_v24 }
0x137a   : > { %v2880_v43 = vmul.f32 0.7978846, %v2878_v33 }
0x137b   : > { %v2881_v34 = vmul.f32 0.7978846, %v2879_v42 }
0x137c   : > { %3934 = vtanh.f32 %v2880_v43 }
0x137d   : > { %3936 = vtanh.f32 %v2881_v34 }
0x1386   : > { %v3935_v46 = vpop.eup %3934 }
0x1387   : > { %v3937_v45 = vpop.eup %3936  ;;  %v2884_v35 = vadd.f32 1.0, %v3935_v46 }
0x1388   : > { %v2885_v36 = vadd.f32 1.0, %v3937_v45 }
0x1389   : > { %v2886_v38 = vmul.f32 0.5, %v2884_v35 }
0x138a   : > { %v2887_v40 = vmul.f32 0.5, %v2885_v36 }
0x138b   : > { %v2888_v41 = vmul.f32 %v2886_v38, %v2866_v22 }
0x138c   : > { %v2889_v44 = vmul.f32 %v2887_v40, %v2868_v24 }
0x138d   : > { %v2890_v48 = vpack.c.bf16 %v2888_v41, %v2888_v41 }
0x138e   : > { %v2891_v47 = vpack.c.bf16 %v2889_v44, %v2889_v44 }
0x1390   : > { %3061 = vmatprep.mubr.bf16.mxu0 %v2891_v47 }
0x1391   : > { %3062 = vmatmul.mubr.bf16.vlgmr.msra.gmra.mrb[36].mxu0 %v2890_v48 }
0x1464   : > { %v3497_v15 = vpop.f32.mrb[36].mxu0 }
0x1465   : > { %v3498_v49 = vpop.f32.mrb[37].mxu0 }
0x1466   : > { %v3499_v50 = vadd.f32 %v3498_v49, %v3497_v15  ;;  %v3500_v30 = vpop.f32.mrb[38].mxu0 }
0x1467   : > { %v3501_v51 = vpop.f32.mrb[39].mxu0 }
0x1468   : > { %v3064_v52 = vadd.f32 %v3499_v50, %v3368_v37 }
0x146a   : > { %v3069_v53 = vadd.f32 %v3064_v52, %v4580_v0  ;;  %v3388_v0 = vld [vmem:[%s4644_s18 + $0x1] ss:$0 sm:$0xff] }
0x146c   : > { %3074 = vadd.xlane.f32.xlu0 %v3069_v53 }
0x14f9   : > { %v3075_v54 = vpop.xlane.xlu0 %3074 }
0x14fa   : > { %v3076_v55 = vmul.f32 0.0078125, %v3075_v54 }
0x14fc   : > { %v3077_v56 = vsub.f32 %v3069_v53, %v3076_v55 }
0x14fe   : > { %v3078_v57 = vmul.f32 %v3077_v56, %v3077_v56 }
0x1500   : > { %3079 = vadd.xlane.f32.xlu1 %v3078_v57 }
0x158d   : > { %v3080_v59 = vpop.xlane.xlu1 %3079 }
0x158e   : > { %v3081_v60 = vmul.f32 0.0078125, %v3080_v59 }
0x1590   : > { %v3082_v61 = vadd.f32 1e-12, %v3081_v60 }
0x1592   : > { %3938 = vrsqrt.f32 %v3082_v61 }
0x159c   : > { %v3939_v62 = vpop.eup %3938 }
0x159d   : > { %v3084_v1 = vmul.f32 %v3939_v62, %v3077_v56 }
0x159f   : > { %v3091_v2 = vmul.f32 %v3387_v63, %v3084_v1 }
0x15a1   : > { %v3098_v4 = vadd.f32 %v3388_v0, %v3091_v2 }
0x15a3   : > { %3099 = vst [vmem:[%s574_s28] sm:$0xff] %v3098_v4 }
0x15a4 PF: > { %s4646_s30 = sld [smem:[#allocation9_spill]] }
0x15aa   : > { %s28_s21 = sadd.s32 1, %s4646_s30  }
0x15ab   : > { %p25_p5 = scmp.ge.s32.totalorder %s28_s21, 4  }
0x15ad   :  { %27 = sbr.rel (!%p25_p5) target bundleno = 7 (0x7), region = 142 }
0x15b4   :  { %3119 = vsyncpa [#allocation3], 1 }
0x15b5   :  { %3121 = vsyncpa [#allocation3 + $0x1], 1 }
0x15b6   :  { %3122 = vsyncpa [#allocation5], 1 }

</bundles_post_ra>
